<compile_context>
chip_gen: v7x
topology: tpu7x:2x2x1
jax: 0.10.0
libtpu: 0.0.40
codegen_flags: <defaults>
</compile_context>

<pallas_src>
import functools

import jax
import jax.numpy as jnp
from jax.experimental import pallas as pl
from jax.experimental.pallas import tpu as pltpu

INPUT_SIZE = 784
HIDDEN_SIZES = [512, 256, 128]
NUM_CLASSES = 10
NUM_CLASSES_PADDED = 128  # lane-dense output width
BN_EPS = 1e-5


def _round_up(n, m):
    return ((n + m - 1) // m) * m


def _mlp_kernel(x_ref,
                w1_ref, b1_ref,
                w2_ref, b2_ref,
                w3_ref, b3_ref,
                w4_ref, b4_ref,
                o_ref):
    """Whole-MLP forward on one batch tile.

    x tile arrives f32 and is cast to bf16 here (removes a separate wrapper
    cast pass over HBM).  Weights are bf16 with eval-mode BN already folded in,
    biases f32, MXU accumulation f32, ReLU between hidden layers, dropout is
    identity (eval).  Output is an unmasked lane-dense (tile, 128) f32 store.
    """
    h = x_ref[...].astype(jnp.bfloat16)  # (tile, 784) bf16

    # Layer 1: Linear(+folded BN) -> ReLU
    h = jnp.dot(h, w1_ref[...], preferred_element_type=jnp.float32) + b1_ref[...]
    h = jnp.maximum(h, 0.0).astype(jnp.bfloat16)

    # Layer 2
    h = jnp.dot(h, w2_ref[...], preferred_element_type=jnp.float32) + b2_ref[...]
    h = jnp.maximum(h, 0.0).astype(jnp.bfloat16)

    # Layer 3
    h = jnp.dot(h, w3_ref[...], preferred_element_type=jnp.float32) + b3_ref[...]
    h = jnp.maximum(h, 0.0).astype(jnp.bfloat16)

    # Output layer (columns zero-padded 10 -> 128 for a lane-dense store).
    o_ref[...] = (jnp.dot(h, w4_ref[...], preferred_element_type=jnp.float32)
                  + b4_ref[...])


def _full_spec(shape):
    # Whole-array block, constant block index -> resident across all grid steps.
    return pl.BlockSpec(shape, lambda i: (0,) * len(shape))


def _choose_batch_tile(batch, max_tile):
    """Adaptive batch tile: no huge padding for small B, >=2 grid steps for
    large B (v7x megacore), always a multiple of 128 (v5e/v6e/v7x friendly)."""
    tile = min(max_tile, _round_up(batch, 128))
    if batch >= 256:
        # Ensure at least 2 grid steps so ("parallel",) can use both v7x TCs.
        tile = min(tile, _round_up(-(-batch // 2), 128))
    return max(tile, 128)


@functools.partial(jax.jit, static_argnames=("max_batch_tile",))
def feedforward_nn_forward(x, params, max_batch_tile=1024):
    """x: (B, 1, 28, 28) or (B, 784) float32. Returns (B, NUM_CLASSES) f32 logits."""
    B = x.shape[0]
    x2d = x.reshape(B, -1)  # x.view(x.size(0), -1); no cast, no pad, no copy
    assert x2d.shape[1] == INPUT_SIZE

    tile = _choose_batch_tile(B, max_batch_tile)
    grid = pl.cdiv(B, tile)  # partial last tile handled by Pallas masking

    (w1, b1, w2, b2, w3, b3, w4, b4) = params

    in_specs = [
        pl.BlockSpec((tile, INPUT_SIZE), lambda i: (i, 0)),  # f32 x tile
        _full_spec(w1.shape), _full_spec(b1.shape),
        _full_spec(w2.shape), _full_spec(b2.shape),
        _full_spec(w3.shape), _full_spec(b3.shape),
        _full_spec(w4.shape), _full_spec(b4.shape),
    ]

    out_padded = pl.pallas_call(
        _mlp_kernel,
        out_shape=jax.ShapeDtypeStruct((B, NUM_CLASSES_PADDED), jnp.float32),
        grid_spec=pltpu.PrefetchScalarGridSpec(
            num_scalar_prefetch=0,
            grid=(grid,),
            in_specs=in_specs,
            out_specs=pl.BlockSpec((tile, NUM_CLASSES_PADDED), lambda i: (i, 0)),
        ),
        compiler_params=pltpu.CompilerParams(
            dimension_semantics=("parallel",),   # batch grid shards across TCs
            vmem_limit_bytes=32 * 1024 * 1024,   # ample; safe on v7x's 64 MiB
        ),
    )(x2d, w1, b1, w2, b2, w3, b3, w4, b4)

    return out_padded[:, :NUM_CLASSES]


def init_params(key):
    """Deterministic init mirroring the PyTorch module, eval-mode BN folded.

    Linear: xavier_uniform_ weight, zero bias.
    BatchNorm1d (eval): gamma=1, beta=0, running_mean=0, running_var=1.
      scale = gamma / sqrt(var + eps), shift = beta - mean * scale
      folded as: W' = W * scale (per output column), b' = b * scale + shift.
    Weights stored transposed (in, out) in bf16; biases f32.
    Final Linear zero-padded from 10 to 128 output columns (lane-dense store).
    """
    sizes = [INPUT_SIZE] + HIDDEN_SIZES + [NUM_CLASSES]
    params = []
    keys = jax.random.split(key, len(sizes) - 1)
    for li, (fan_in, fan_out) in enumerate(zip(sizes[:-1], sizes[1:])):
        bound = (6.0 / (fan_in + fan_out)) ** 0.5
        w = jax.random.uniform(keys[li], (fan_in, fan_out),
                               minval=-bound, maxval=bound, dtype=jnp.float32)
        b = jnp.zeros((1, fan_out), dtype=jnp.float32)
        if li < len(HIDDEN_SIZES):
            gamma = jnp.ones((fan_out,), dtype=jnp.float32)
            beta = jnp.zeros((fan_out,), dtype=jnp.float32)
            run_mean = jnp.zeros((fan_out,), dtype=jnp.float32)
            run_var = jnp.ones((fan_out,), dtype=jnp.float32)
            scale = gamma / jnp.sqrt(run_var + BN_EPS)
            shift = beta - run_mean * scale
            w = w * scale[None, :]
            b = b * scale[None, :] + shift[None, :]
        else:
            pad = NUM_CLASSES_PADDED - fan_out
            w = jnp.pad(w, ((0, 0), (0, pad)))
            b = jnp.pad(b, ((0, 0), (0, pad)))
        params.extend([w.astype(jnp.bfloat16), b])  # bf16 weight, f32 bias
    return tuple(params)


def _reference_forward(x, params):
    """Pure-JAX reference with identical math (bf16 compute, f32 accumulate)."""
    (w1, b1, w2, b2, w3, b3, w4, b4) = params
    h = x.reshape(x.shape[0], -1).astype(jnp.bfloat16)
    for w, b in [(w1, b1), (w2, b2), (w3, b3)]:
        h = jnp.dot(h, w, preferred_element_type=jnp.float32) + b
        h = jnp.maximum(h, 0.0).astype(jnp.bfloat16)
    out = jnp.dot(h, w4, preferred_element_type=jnp.float32) + b4
    return out[:, :NUM_CLASSES]


if __name__ == "__main__":
    key = jax.random.PRNGKey(0)
    pkey, xkey, xkey2 = jax.random.split(key, 3)

    params = init_params(pkey)

    # Small "image" batch: (B, 1, 28, 28), flattened to (B, 784) in the wrapper.
    x = jax.random.normal(xkey, (8, 1, 28, 28), dtype=jnp.float32)
    out = jax.block_until_ready(feedforward_nn_forward(x, params))
    ref = _reference_forward(x, params)
    assert out.shape == (8, NUM_CLASSES)
    assert jnp.allclose(out, ref, atol=2e-2, rtol=2e-2), "mismatch vs reference (B=8)"

    # Exercise the multi-step grid + partial last tile path (B=260 -> tile 128,
    # grid 3, last tile has 4 valid rows).
    x2 = jax.random.normal(xkey2, (260, 784), dtype=jnp.float32)
    out2 = jax.block_until_ready(feedforward_nn_forward(x2, params))
    ref2 = _reference_forward(x2, params)
    assert out2.shape == (260, NUM_CLASSES)
    assert jnp.allclose(out2, ref2, atol=2e-2, rtol=2e-2), "mismatch vs reference (B=260)"

    print("KERNEL_OK")
</pallas_src>

<mosaic_0001>
module attributes {stable_mosaic.version = 11 : i64} {
  func.func @_mlp_kernel(%arg0: i32, %arg1: memref<128x784xf32, #tpu.memory_space<vmem>>, %arg2: memref<784x512xbf16, #tpu.memory_space<vmem>>, %arg3: memref<1x512xf32, #tpu.memory_space<vmem>>, %arg4: memref<512x256xbf16, #tpu.memory_space<vmem>>, %arg5: memref<1x256xf32, #tpu.memory_space<vmem>>, %arg6: memref<256x128xbf16, #tpu.memory_space<vmem>>, %arg7: memref<1x128xf32, #tpu.memory_space<vmem>>, %arg8: memref<128x128xbf16, #tpu.memory_space<vmem>>, %arg9: memref<1x128xf32, #tpu.memory_space<vmem>>, %arg10: memref<128x128xf32, #tpu.memory_space<vmem>>) attributes {dimension_semantics = [#tpu.dimension_semantics<parallel>], iteration_bounds = array<i64: 1>, scalar_prefetch = 0 : i64, scratch_operands = 0 : i64, tpu.core_type = #tpu.core_type<tc>, window_params = [{transform_indices = @transform_0, window_bounds = array<i64: 128, 784>}, {pipeline_mode = #tpu.pipeline_mode<synchronous>, transform_indices = @transform_1, window_bounds = array<i64: 784, 512>}, {pipeline_mode = #tpu.pipeline_mode<synchronous>, transform_indices = @transform_2, window_bounds = array<i64: 1, 512>}, {pipeline_mode = #tpu.pipeline_mode<synchronous>, transform_indices = @transform_3, window_bounds = array<i64: 512, 256>}, {pipeline_mode = #tpu.pipeline_mode<synchronous>, transform_indices = @transform_4, window_bounds = array<i64: 1, 256>}, {pipeline_mode = #tpu.pipeline_mode<synchronous>, transform_indices = @transform_5, window_bounds = array<i64: 256, 128>}, {pipeline_mode = #tpu.pipeline_mode<synchronous>, transform_indices = @transform_6, window_bounds = array<i64: 1, 128>}, {pipeline_mode = #tpu.pipeline_mode<synchronous>, transform_indices = @transform_7, window_bounds = array<i64: 128, 128>}, {pipeline_mode = #tpu.pipeline_mode<synchronous>, transform_indices = @transform_8, window_bounds = array<i64: 1, 128>}, {transform_indices = @transform_9, window_bounds = array<i64: 128, 128>}]} {
    %c0 = arith.constant 0 : index
    %c0_0 = arith.constant 0 : index
    %0 = vector.load %arg1[%c0, %c0_0] : memref<128x784xf32, #tpu.memory_space<vmem>>, vector<128x784xf32>
    %1 = arith.truncf %0 : vector<128x784xf32> to vector<128x784xbf16>
    %c0_1 = arith.constant 0 : index
    %c0_2 = arith.constant 0 : index
    %2 = vector.load %arg2[%c0_1, %c0_2] : memref<784x512xbf16, #tpu.memory_space<vmem>>, vector<784x512xbf16>
    %cst = arith.constant dense<0.000000e+00> : vector<128x512xf32>
    %3 = tpu.matmul %1, %2, %cst {dimension_numbers = #tpu.dot_dimension_numbers<[1], [0], [0], [1], [0, 0, 1, 1], [], []>} : vector<128x784xbf16>, vector<784x512xbf16>, vector<128x512xf32> -> vector<128x512xf32>
    %c0_3 = arith.constant 0 : index
    %c0_4 = arith.constant 0 : index
    %4 = vector.load %arg3[%c0_3, %c0_4] : memref<1x512xf32, #tpu.memory_space<vmem>>, vector<1x512xf32>
    %5 = vector.broadcast %4 : vector<1x512xf32> to vector<128x512xf32>
    %6 = arith.addf %3, %5 : vector<128x512xf32>
    %cst_5 = arith.constant 0.000000e+00 : f32
    %7 = vector.broadcast %cst_5 : f32 to vector<128x512xf32>
    %8 = arith.maximumf %6, %7 : vector<128x512xf32>
    %9 = arith.truncf %8 : vector<128x512xf32> to vector<128x512xbf16>
    %c0_6 = arith.constant 0 : index
    %c0_7 = arith.constant 0 : index
    %10 = vector.load %arg4[%c0_6, %c0_7] : memref<512x256xbf16, #tpu.memory_space<vmem>>, vector<512x256xbf16>
    %cst_8 = arith.constant dense<0.000000e+00> : vector<128x256xf32>
    %11 = tpu.matmul %9, %10, %cst_8 {dimension_numbers = #tpu.dot_dimension_numbers<[1], [0], [0], [1], [0, 0, 1, 1], [], []>} : vector<128x512xbf16>, vector<512x256xbf16>, vector<128x256xf32> -> vector<128x256xf32>
    %c0_9 = arith.constant 0 : index
    %c0_10 = arith.constant 0 : index
    %12 = vector.load %arg5[%c0_9, %c0_10] : memref<1x256xf32, #tpu.memory_space<vmem>>, vector<1x256xf32>
    %13 = vector.broadcast %12 : vector<1x256xf32> to vector<128x256xf32>
    %14 = arith.addf %11, %13 : vector<128x256xf32>
    %cst_11 = arith.constant 0.000000e+00 : f32
    %15 = vector.broadcast %cst_11 : f32 to vector<128x256xf32>
    %16 = arith.maximumf %14, %15 : vector<128x256xf32>
    %17 = arith.truncf %16 : vector<128x256xf32> to vector<128x256xbf16>
    %c0_12 = arith.constant 0 : index
    %c0_13 = arith.constant 0 : index
    %18 = vector.load %arg6[%c0_12, %c0_13] : memref<256x128xbf16, #tpu.memory_space<vmem>>, vector<256x128xbf16>
    %cst_14 = arith.constant dense<0.000000e+00> : vector<128x128xf32>
    %19 = tpu.matmul %17, %18, %cst_14 {dimension_numbers = #tpu.dot_dimension_numbers<[1], [0], [0], [1], [0, 0, 1, 1], [], []>} : vector<128x256xbf16>, vector<256x128xbf16>, vector<128x128xf32> -> vector<128x128xf32>
    %c0_15 = arith.constant 0 : index
    %c0_16 = arith.constant 0 : index
    %20 = vector.load %arg7[%c0_15, %c0_16] : memref<1x128xf32, #tpu.memory_space<vmem>>, vector<1x128xf32>
    %21 = vector.broadcast %20 : vector<1x128xf32> to vector<128x128xf32>
    %22 = arith.addf %19, %21 : vector<128x128xf32>
    %cst_17 = arith.constant 0.000000e+00 : f32
    %23 = vector.broadcast %cst_17 : f32 to vector<128x128xf32>
    %24 = arith.maximumf %22, %23 : vector<128x128xf32>
    %25 = arith.truncf %24 : vector<128x128xf32> to vector<128x128xbf16>
    %c0_18 = arith.constant 0 : index
    %c0_19 = arith.constant 0 : index
    %26 = vector.load %arg8[%c0_18, %c0_19] : memref<128x128xbf16, #tpu.memory_space<vmem>>, vector<128x128xbf16>
    %cst_20 = arith.constant dense<0.000000e+00> : vector<128x128xf32>
    %27 = tpu.matmul %25, %26, %cst_20 {dimension_numbers = #tpu.dot_dimension_numbers<[1], [0], [0], [1], [0, 0, 1, 1], [], []>} : vector<128x128xbf16>, vector<128x128xbf16>, vector<128x128xf32> -> vector<128x128xf32>
    %c0_21 = arith.constant 0 : index
    %c0_22 = arith.constant 0 : index
    %28 = vector.load %arg9[%c0_21, %c0_22] : memref<1x128xf32, #tpu.memory_space<vmem>>, vector<1x128xf32>
    %29 = vector.broadcast %28 : vector<1x128xf32> to vector<128x128xf32>
    %30 = arith.addf %27, %29 : vector<128x128xf32>
    %c0_23 = arith.constant 0 : index
    %c0_24 = arith.constant 0 : index
    %31 = vector.load %arg10[%c0_23, %c0_24] : memref<128x128xf32, #tpu.memory_space<vmem>>, vector<128x128xf32>
    tpu.vector_store %arg10[%c0_23, %c0_24], %30 {strides = array<i32>} : memref<128x128xf32, #tpu.memory_space<vmem>>, vector<128x128xf32>,
    return
  }
  func.func @transform_0(%arg0: i32) -> (i32, i32) {
    %c0_i32 = arith.constant 0 : i32
    %c0_i32_0 = arith.constant 0 : i32
    return %arg0, %c0_i32 : i32, i32
  }
  func.func @transform_1(%arg0: i32) -> (i32, i32) {
    %c0_i32 = arith.constant 0 : i32
    %c0_i32_0 = arith.constant 0 : i32
    %c0_i32_1 = arith.constant 0 : i32
    return %c0_i32, %c0_i32_0 : i32, i32
  }
  func.func @transform_2(%arg0: i32) -> (i32, i32) {
    %c0_i32 = arith.constant 0 : i32
    %c0_i32_0 = arith.constant 0 : i32
    %c0_i32_1 = arith.constant 0 : i32
    return %c0_i32, %c0_i32_0 : i32, i32
  }
  func.func @transform_3(%arg0: i32) -> (i32, i32) {
    %c0_i32 = arith.constant 0 : i32
    %c0_i32_0 = arith.constant 0 : i32
    %c0_i32_1 = arith.constant 0 : i32
    return %c0_i32, %c0_i32_0 : i32, i32
  }
  func.func @transform_4(%arg0: i32) -> (i32, i32) {
    %c0_i32 = arith.constant 0 : i32
    %c0_i32_0 = arith.constant 0 : i32
    %c0_i32_1 = arith.constant 0 : i32
    return %c0_i32, %c0_i32_0 : i32, i32
  }
  func.func @transform_5(%arg0: i32) -> (i32, i32) {
    %c0_i32 = arith.constant 0 : i32
    %c0_i32_0 = arith.constant 0 : i32
    %c0_i32_1 = arith.constant 0 : i32
    return %c0_i32, %c0_i32_0 : i32, i32
  }
  func.func @transform_6(%arg0: i32) -> (i32, i32) {
    %c0_i32 = arith.constant 0 : i32
    %c0_i32_0 = arith.constant 0 : i32
    %c0_i32_1 = arith.constant 0 : i32
    return %c0_i32, %c0_i32_0 : i32, i32
  }
  func.func @transform_7(%arg0: i32) -> (i32, i32) {
    %c0_i32 = arith.constant 0 : i32
    %c0_i32_0 = arith.constant 0 : i32
    %c0_i32_1 = arith.constant 0 : i32
    return %c0_i32, %c0_i32_0 : i32, i32
  }
  func.func @transform_8(%arg0: i32) -> (i32, i32) {
    %c0_i32 = arith.constant 0 : i32
    %c0_i32_0 = arith.constant 0 : i32
    %c0_i32_1 = arith.constant 0 : i32
    return %c0_i32, %c0_i32_0 : i32, i32
  }
  func.func @transform_9(%arg0: i32) -> (i32, i32) {
    %c0_i32 = arith.constant 0 : i32
    %c0_i32_0 = arith.constant 0 : i32
    return %arg0, %c0_i32 : i32, i32
  }
}

</mosaic_0001>

<bundles_post_ra>
// kernel: feedforward_nn_forward.1
= control target key start
LH: loop header
LB: loop body
LE: loop exit
PB: predicated region body
PF: predicated region fallthrough
CT: control target
= control target key end

     0   :  { %14 = vsyncpa [#allocation3], 0  ;;  %s5828_s0 = inlined_call_operand.vmem [shape: f32[8,784], index: 0, kind: input, shape index: {}]   ;;  %s5829_s1 = inlined_call_operand.hbm [shape: bf16[784,512], index: 1, kind: input, shape index: {}]   ;;  %s5830_s2 = inlined_call_operand.vmem [shape: f32[1,512], index: 2, kind: input, shape index: {}]   ;;  %s5831_s3 = inlined_call_operand.vmem [shape: bf16[512,256], index: 3, kind: input, shape index: {}]   ;;  %s5832_s4 = inlined_call_operand.vmem [shape: f32[1,256], index: 4, kind: input, shape index: {}]   ;;  %s5833_s5 = inlined_call_operand.vmem [shape: bf16[256,128], index: 5, kind: input, shape index: {}]   ;;  %s5834_s6 = inlined_call_operand.vmem [shape: f32[1,128], index: 6, kind: input, shape index: {}]   ;;  %s5835_s7 = inlined_call_operand.vmem [shape: bf16[128,128], index: 7, kind: input, shape index: {}]   ;;  %s5836_s8 = inlined_call_operand.vmem [shape: f32[1,128], index: 8, kind: input, shape index: {}]   ;;  %s5837_s9 = inlined_call_operand.hbm [shape: f32[8,128], index: 9, kind: output, shape index: {}]  }
   0x1   :  { %15 = vsyncpa [#allocation4], 0  ;;  %s4785_s30 = smov [#allocation2]   ;;  %s4737_s13 = scalar_lea.hbm %s5829_s1, 25088 }
   0x2   :  { %s23_s10 = sshll.u32 %s4785_s30, 4  ;;  %p4738_p0 = scmp.ne.s32.totalorder %s5829_s1, %s4737_s13  ;;  %s24_s10 = int_to_ptr.vmem [resolvable:$true] %s23_s10 }
   0x3   :  { %p4741_p1 = scmp.lt.u32.totalorder %s4737_s13, %s5829_s1 }
   0x5   :  { %p4743_p2 = pnand %p4741_p1, %p4738_p0 }
   0x7   :  { %4746 = shalt.err (!%p4743_p2)
}
   0x8   :  { %s4747_s18 = scalar_lea.vmem %s24_s10, 25088  ;;  %p4752_p4 = scmp.lt.s32.totalorder %s24_s10, %s24_s10 }
   0x9   :  { %p4748_p3 = scmp.ne.s32.totalorder %s24_s10, %s4747_s18  ;;  %p4753_p5 = scmp.lt.s32.totalorder %s4747_s18, %s4747_s18 }
   0xb   :  { %p4754_p6 = por %p4753_p5, %p4752_p4 }
   0xd   :  { %p4755_p7 = pnand %p4754_p6, %p4748_p3 }
   0xf   :  { %4758 = shalt.err (!%p4755_p7)
}
  0x10   :  { %s4786_s19 = smov 256   ;;  %s4787_s20 = smov 16  }
  0x11   :  { %29 = dma.hbm_to_vmem [thread:$0]  %s5829_s1, 25088, %s24_s10, [#allocation3], %s4786_s19, %s4786_s19, %s4787_s20  }
  0x12   :  { %4781 = dma.done.wait [#allocation3], 25088  }
  0x13   :  { %4782 = vsyncadd [#allocation3], 4294942208  ;;  %v4788_v0 = vmov 0   ;;  %v4323_v1 = vld [vmem:[#allocation2 + $0x4] ss:$16 sps:$4 sm:$0xff]   ;;  %v61_v7 = vld [vmem:[%s5828_s0 + $0x68] sm:$0xff] }
  0x14   :  { %1810 = vmatprep.mubr.bf16.mxu1 %v4788_v0  ;;  %v4325_v2 = vld [vmem:[#allocation2 + $0x604] ss:$16 sps:$4 sm:$0xff]   ;;  %1439 = vmatprep.subr.bf16.mxu0 %v4323_v1  ;;  %v4327_v3 = vld [vmem:[#allocation2] ss:$16 sps:$4 sm:$0xff]   ;;  %vm1414_vm0 = vcmask 130048   ;;  %v75_v18 = vld [vmem:[%s5828_s0 + $0xd8] sm:$0xff] }
  0x15   :  { %v4328_v4 = vld [vmem:[#allocation2 + $0x600] ss:$16 sps:$4 sm:$0xff]   ;;  %1778 = vmatprep.subr.bf16.mxu1 %v4325_v2  ;;  %v4329_v5 = vld [vmem:[#allocation2 + $0x24] ss:$16 sps:$4 sm:$0xff]   ;;  %1440 = vmatpush1.bf16.msra.mxu0 %v4327_v3  ;;  %v4331_v9 = vld [vmem:[#allocation2 + $0x8] ss:$16 sps:$4 sm:$0xff]  }
  0x16   :  { %v54_v6 = vld [vmem:[%s5828_s0 + $0x30] sm:$0xff]  ;;  %1779 = vmatpush1.bf16.msra.mxu1 %v4328_v4  ;;  %1441 = vmatprep.subr.bf16.mxu0 %v4329_v5  ;;  %v4333_v10 = vld [vmem:[#allocation2 + $0xc] ss:$16 sps:$4 sm:$0xff]   ;;  %v4337_v13 = vld [vmem:[#allocation2 + $0x28] ss:$16 sps:$4 sm:$0xff]  }
  0x17   :  { %v4861_v8 = vpack.c.bf16 %v61_v7, %v54_v6  ;;  %v4334_v11 = vld [vmem:[#allocation2 + $0x20] ss:$16 sps:$4 sm:$0xff]   ;;  %v4335_v12 = vld [vmem:[#allocation2 + $0x44] ss:$16 sps:$4 sm:$0xff]   ;;  %1891 = vmatprep.subr.bf16.mxu1 %v4333_v10  ;;  %v4339_v14 = vld [vmem:[#allocation2 + $0x2c] ss:$16 sps:$4 sm:$0xff]  }
  0x18   :  { %v4340_v15 = vld [vmem:[#allocation2 + $0x40] ss:$16 sps:$4 sm:$0xff]   ;;  %v4341_v16 = vld [vmem:[#allocation2 + $0x64] ss:$16 sps:$4 sm:$0xff]   ;;  %v4343_v20 = vld [vmem:[#allocation2 + $0x48] ss:$16 sps:$4 sm:$0xff]  }
  0x19   :  { %3762 = vmatmul.mubr.msk.bf16.vlgmr.msra.gmra.mrb[0].mxu1 %vm1414_vm0, %v4861_v8  ;;  %1442 = vmatpush1.bf16.msra.mxu0 %v4334_v11  ;;  %v68_v17 = vld [vmem:[%s5828_s0 + $0xa0] sm:$0xff]  ;;  %v4345_v21 = vld [vmem:[#allocation2 + $0x4c] ss:$16 sps:$4 sm:$0xff]   ;;  %v4349_v24 = vld [vmem:[#allocation2 + $0x68] ss:$16 sps:$4 sm:$0xff]  }
  0x1a   :  { %1892 = vmatpush1.bf16.msra.mxu1 %v4331_v9  ;;  %1443 = vmatprep.subr.bf16.mxu0 %v4335_v12  ;;  %v4872_v19 = vpack.c.bf16 %v75_v18, %v68_v17  ;;  %v4346_v22 = vld [vmem:[#allocation2 + $0x60] ss:$16 sps:$4 sm:$0xff]   ;;  %v4347_v23 = vld [vmem:[#allocation2 + $0x84] ss:$16 sps:$4 sm:$0xff]   ;;  %v4351_v25 = vld [vmem:[#allocation2 + $0x6c] ss:$16 sps:$4 sm:$0xff]  }
  0x1b   :  { %1820 = vmatprep.mubr.bf16.mxu1 %v4788_v0  ;;  %1893 = vmatprep.subr.bf16.mxu1 %v4339_v14  ;;  %v4352_v26 = vld [vmem:[#allocation2 + $0x80] ss:$16 sps:$4 sm:$0xff]   ;;  %v89_v28 = vld [vmem:[%s5828_s0 + $0x148] sm:$0xff]  ;;  %v4353_v29 = vld [vmem:[#allocation2 + $0xa4] ss:$16 sps:$4 sm:$0xff]  }
  0x1c   :  { %v82_v27 = vld [vmem:[%s5828_s0 + $0x110] sm:$0xff]  ;;  %v4357_v30 = vld [vmem:[#allocation2 + $0x8c] ss:$16 sps:$4 sm:$0xff]   ;;  %v4355_v32 = vld [vmem:[#allocation2 + $0x88] ss:$16 sps:$4 sm:$0xff]  }
  0x1d   :  { %1444 = vmatpush1.bf16.msra.mxu0 %v4340_v15  ;;  %v4883_v31 = vpack.c.bf16 %v89_v28, %v82_v27  ;;  %v4358_v33 = vld [vmem:[#allocation2 + $0xa0] ss:$16 sps:$4 sm:$0xff]   ;;  %v4359_v34 = vld [vmem:[#allocation2 + $0xc4] ss:$16 sps:$4 sm:$0xff]   ;;  %v4363_v35 = vld [vmem:[#allocation2 + $0xac] ss:$16 sps:$4 sm:$0xff]  }
  0x1e   :  { %1894 = vmatpush1.bf16.msra.mxu1 %v4337_v13  ;;  %1445 = vmatprep.subr.bf16.mxu0 %v4341_v16  ;;  %v4361_v36 = vld [vmem:[#allocation2 + $0xa8] ss:$16 sps:$4 sm:$0xff]   ;;  %v4364_v37 = vld [vmem:[#allocation2 + $0xc0] ss:$16 sps:$4 sm:$0xff]   ;;  %v4365_v38 = vld [vmem:[#allocation2 + $0xe4] ss:$16 sps:$4 sm:$0xff]  }
  0x1f   :  { %1895 = vmatprep.subr.bf16.mxu1 %v4345_v21  ;;  %v96_v39 = vld [vmem:[%s5828_s0 + $0x180] sm:$0xff]  ;;  %v103_v40 = vld [vmem:[%s5828_s0 + $0x1b8] sm:$0xff]  ;;  %v110_v49 = vld [vmem:[%s5828_s0 + $0x1f0] sm:$0xff] }
  0x20   :  { %v4369_v41 = vld [vmem:[#allocation2 + $0xcc] ss:$16 sps:$4 sm:$0xff]   ;;  %v4894_v42 = vpack.c.bf16 %v103_v40, %v96_v39  ;;  %v4367_v43 = vld [vmem:[#allocation2 + $0xc8] ss:$16 sps:$4 sm:$0xff]   ;;  %v4370_v44 = vld [vmem:[#allocation2 + $0xe0] ss:$16 sps:$4 sm:$0xff]  }
  0x21   :  { %3763 = vmatmul.mubr.msk.bf16.gmra.mrb[4].mxu1 %vm1414_vm0, %v4872_v19  ;;  %1446 = vmatpush1.bf16.msra.mxu0 %v4346_v22  ;;  %v4371_v45 = vld [vmem:[#allocation2 + $0x104] ss:$16 sps:$4 sm:$0xff]   ;;  %v4375_v46 = vld [vmem:[#allocation2 + $0xec] ss:$16 sps:$4 sm:$0xff]   ;;  %v4373_v47 = vld [vmem:[#allocation2 + $0xe8] ss:$16 sps:$4 sm:$0xff]  }
  0x22   :  { %1896 = vmatpush1.bf16.msra.mxu1 %v4343_v20  ;;  %1447 = vmatprep.subr.bf16.mxu0 %v4347_v23  ;;  %v4376_v48 = vld [vmem:[#allocation2 + $0x100] ss:$16 sps:$4 sm:$0xff]   ;;  %v117_v50 = vld [vmem:[%s5828_s0 + $0x228] sm:$0xff]  ;;  %v4377_v51 = vld [vmem:[#allocation2 + $0x124] ss:$16 sps:$4 sm:$0xff]  }
  0x23   :  { %1897 = vmatprep.subr.bf16.mxu1 %v4351_v25  ;;  %1830 = vmatprep.mubr.bf16.mxu1 %v4788_v0  ;;  %v4381_v52 = vld [vmem:[#allocation2 + $0x10c] ss:$16 sps:$4 sm:$0xff]   ;;  %v4905_v53 = vpack.c.bf16 %v117_v50, %v110_v49  ;;  %v4379_v54 = vld [vmem:[#allocation2 + $0x108] ss:$16 sps:$4 sm:$0xff]   ;;  %v4382_v55 = vld [vmem:[#allocation2 + $0x120] ss:$16 sps:$4 sm:$0xff]  }
  0x24   :  { %v4383_v56 = vld [vmem:[#allocation2 + $0x144] ss:$16 sps:$4 sm:$0xff]   ;;  %v4387_v57 = vld [vmem:[#allocation2 + $0x12c] ss:$16 sps:$4 sm:$0xff]   ;;  %v4385_v58 = vld [vmem:[#allocation2 + $0x128] ss:$16 sps:$4 sm:$0xff]  }
  0x25   :  { %1448 = vmatpush1.bf16.msra.mxu0 %v4352_v26  ;;  %v4388_v59 = vld [vmem:[#allocation2 + $0x140] ss:$16 sps:$4 sm:$0xff]   ;;  %v131_v61 = vld [vmem:[%s5828_s0 + $0x298] sm:$0xff]  ;;  %v4389_v62 = vld [vmem:[#allocation2 + $0x164] ss:$16 sps:$4 sm:$0xff]  }
  0x26   :  { %1898 = vmatpush1.bf16.msra.mxu1 %v4349_v24  ;;  %1449 = vmatprep.subr.bf16.mxu0 %v4353_v29  ;;  %v124_v60 = vld [vmem:[%s5828_s0 + $0x260] sm:$0xff]  ;;  %v4393_v63 = vld [vmem:[#allocation2 + $0x14c] ss:$16 sps:$4 sm:$0xff]   ;;  %v4391_v2 = vld [vmem:[#allocation2 + $0x148] ss:$16 sps:$4 sm:$0xff]  }
  0x27   :  { %1899 = vmatprep.subr.bf16.mxu1 %v4357_v30  ;;  %v4916_v1 = vpack.c.bf16 %v131_v61, %v124_v60  ;;  %v4394_v3 = vld [vmem:[#allocation2 + $0x160] ss:$16 sps:$4 sm:$0xff]   ;;  %v4395_v4 = vld [vmem:[#allocation2 + $0x184] ss:$16 sps:$4 sm:$0xff]   ;;  %v4399_v5 = vld [vmem:[#allocation2 + $0x16c] ss:$16 sps:$4 sm:$0xff]  }
  0x28   :  { %v4397_v6 = vld [vmem:[#allocation2 + $0x168] ss:$16 sps:$4 sm:$0xff]   ;;  %v4400_v7 = vld [vmem:[#allocation2 + $0x180] ss:$16 sps:$4 sm:$0xff]   ;;  %v4401_v9 = vld [vmem:[#allocation2 + $0x1a4] ss:$16 sps:$4 sm:$0xff]  }
  0x29   :  { %3764 = vmatmul.mubr.msk.bf16.gmra.mrb[8].mxu1 %vm1414_vm0, %v4883_v31  ;;  %1450 = vmatpush1.bf16.msra.mxu0 %v4358_v33  ;;  %v138_v10 = vld [vmem:[%s5828_s0 + $0x2d0] sm:$0xff]  ;;  %v145_v11 = vld [vmem:[%s5828_s0 + $0x308] sm:$0xff]  ;;  %v56_v13 = vld [vmem:[%s5828_s0 + $0x40] sm:$0xff] }
  0x2a   :  { %1900 = vmatpush1.bf16.msra.mxu1 %v4355_v32  ;;  %1451 = vmatprep.subr.bf16.mxu0 %v4359_v34  ;;  %v49_v12 = vld [vmem:[%s5828_s0 + $0x8] sm:$0xff]  ;;  %v4933_v16 = vpack.c.bf16 %v145_v11, %v138_v10  ;;  %v4406_v18 = vld [vmem:[#allocation2 + $0x1a0] ss:$16 sps:$4 sm:$0xff]   ;;  %v4407_v20 = vld [vmem:[#allocation2 + $0x1c4] ss:$16 sps:$4 sm:$0xff]  }
  0x2b   :  { %1901 = vmatprep.subr.bf16.mxu1 %v4363_v35  ;;  %1840 = vmatprep.mubr.bf16.mxu1 %v4788_v0  ;;  %v4405_v14 = vld [vmem:[#allocation2 + $0x18c] ss:$16 sps:$4 sm:$0xff]   ;;  %v161_v15 = vpack.c.bf16 %v56_v13, %v49_v12  ;;  %v4403_v17 = vld [vmem:[#allocation2 + $0x188] ss:$16 sps:$4 sm:$0xff]   ;;  %v4412_v23 = vld [vmem:[#allocation2 + $0x1c0] ss:$16 sps:$4 sm:$0xff]  }
  0x2c   :  { %v4411_v21 = vld [vmem:[#allocation2 + $0x1ac] ss:$16 sps:$4 sm:$0xff]   ;;  %v4409_v22 = vld [vmem:[#allocation2 + $0x1a8] ss:$16 sps:$4 sm:$0xff]   ;;  %v4413_v24 = vld [vmem:[#allocation2 + $0x1e4] ss:$16 sps:$4 sm:$0xff]  }
  0x2d   :  { %1452 = vmatpush1.bf16.msra.mxu0 %v4364_v37  ;;  %1471 = vmatprep.mubr.bf16.mxu0 %v161_v15  ;;  %v152_v25 = vld [vmem:[%s5828_s0 + $0x340] sm:$0xff]  ;;  %v159_v26 = vld [vmem:[%s5828_s0 + $0x378] sm:$0xff]  ;;  %v70_v40 = vld [vmem:[%s5828_s0 + $0xb0] sm:$0xff] }
  0x2e   :  { %1902 = vmatpush1.bf16.msra.mxu1 %v4361_v36  ;;  %1453 = vmatprep.subr.bf16.mxu0 %v4365_v38  ;;  %v4417_v27 = vld [vmem:[#allocation2 + $0x1cc] ss:$16 sps:$4 sm:$0xff]   ;;  %v4415_v28 = vld [vmem:[#allocation2 + $0x1c8] ss:$16 sps:$4 sm:$0xff]   ;;  %v4944_v29 = vpack.c.bf16 %v159_v26, %v152_v25  ;;  %v4418_v30 = vld [vmem:[#allocation2 + $0x1e0] ss:$16 sps:$4 sm:$0xff]  }
  0x2f   :  { %1903 = vmatprep.subr.bf16.mxu1 %v4369_v41  ;;  %v48_v32 = vld [vmem:[%s5828_s0] sm:$0xff]  ;;  %v55_v33 = vld [vmem:[%s5828_s0 + $0x38] sm:$0xff] }
  0x30   :  { %v4421_v34 = vld [vmem:[#allocation2 + $0x204] ss:$16 sps:$4 sm:$0xff]   ;;  %v4424_v35 = vld [vmem:[#allocation2 + $0x1ec] ss:$16 sps:$4 sm:$0xff]   ;;  %v4419_v36 = vld [vmem:[#allocation2 + $0x200] ss:$16 sps:$4 sm:$0xff]   ;;  %v160_v38 = vpack.c.bf16 %v55_v33, %v48_v32 }
  0x31   :  { %3765 = vmatmul.mubr.msk.bf16.gmra.mrb[12].mxu1 %vm1414_vm0, %v4894_v42  ;;  %1454 = vmatpush1.bf16.msra.mxu0 %v4370_v44  ;;  %v4422_v37 = vld [vmem:[#allocation2 + $0x1e8] ss:$16 sps:$4 sm:$0xff]   ;;  %v4427_v41 = vld [vmem:[#allocation2 + $0x224] ss:$16 sps:$4 sm:$0xff]   ;;  %v4436_v50 = vld [vmem:[#allocation2 + $0x22c] ss:$16 sps:$4 sm:$0xff]  }
  0x32   :  { %1904 = vmatpush1.bf16.msra.mxu1 %v4367_v43  ;;  %1455 = vmatprep.subr.bf16.mxu0 %v4371_v45  ;;  %v63_v39 = vld [vmem:[%s5828_s0 + $0x78] sm:$0xff]  ;;  %v4425_v45 = vld [vmem:[#allocation2 + $0x220] ss:$16 sps:$4 sm:$0xff]   ;;  %v4433_v49 = vld [vmem:[#allocation2 + $0x244] ss:$16 sps:$4 sm:$0xff]  }
  0x33   :  { %1905 = vmatprep.subr.bf16.mxu1 %v4375_v46  ;;  %1850 = vmatprep.mubr.bf16.mxu1 %v4788_v0  ;;  %v4430_v43 = vld [vmem:[#allocation2 + $0x20c] ss:$16 sps:$4 sm:$0xff]   ;;  %v168_v44 = vpack.c.bf16 %v70_v40, %v63_v39  ;;  %v4428_v46 = vld [vmem:[#allocation2 + $0x208] ss:$16 sps:$4 sm:$0xff]   ;;  %v4451_v10 = vld [vmem:[#allocation2 + $0x2a4] ss:$16 sps:$4 sm:$0xff]  }
  0x34   :  { %v4440_v61 = vld [vmem:[#allocation2 + $0x248] ss:$16 sps:$4 sm:$0xff]   ;;  %v4454_v11 = vld [vmem:[#allocation2 + $0x28c] ss:$16 sps:$4 sm:$0xff]   ;;  %v4449_v12 = vld [vmem:[#allocation2 + $0x2a0] ss:$16 sps:$4 sm:$0xff]  }
  0x35   :  { %1456 = vmatpush1.bf16.msra.mxu0 %v4376_v48  ;;  %v69_v48 = vld [vmem:[%s5828_s0 + $0xa8] sm:$0xff]  ;;  %v4463_v26 = vld [vmem:[#allocation2 + $0x2e4] ss:$16 sps:$4 sm:$0xff]   ;;  %v119_v40 = vld [vmem:[%s5828_s0 + $0x238] sm:$0xff] }
  0x36   :  { %1906 = vmatpush1.bf16.msra.mxu1 %v4373_v47  ;;  %1457 = vmatprep.subr.bf16.mxu0 %v4377_v51  ;;  %v62_v47 = vld [vmem:[%s5828_s0 + $0x70] sm:$0xff]  ;;  %v4452_v13 = vld [vmem:[#allocation2 + $0x288] ss:$16 sps:$4 sm:$0xff]   ;;  %v104_v33 = vld [vmem:[%s5828_s0 + $0x1c0] sm:$0xff] }
  0x37   :  { %1907 = vmatprep.subr.bf16.mxu1 %v4381_v52  ;;  %v4431_v51 = vld [vmem:[#allocation2 + $0x240] ss:$16 sps:$4 sm:$0xff]   ;;  %v4434_v52 = vld [vmem:[#allocation2 + $0x228] ss:$16 sps:$4 sm:$0xff]  }
  0x38   :  { %v4458_v25 = vld [vmem:[#allocation2 + $0x2a8] ss:$16 sps:$4 sm:$0xff]  }
  0x39   :  { %3766 = vmatmul.mubr.msk.bf16.gmra.mrb[16].mxu1 %vm1414_vm0, %v4905_v53  ;;  %1458 = vmatpush1.bf16.msra.mxu0 %v4382_v55  ;;  %v77_v55 = vld [vmem:[%s5828_s0 + $0xe8] sm:$0xff] }
  0x3a   :  { %1908 = vmatpush1.bf16.msra.mxu1 %v4379_v54  ;;  %1459 = vmatprep.subr.bf16.mxu0 %v4383_v56  ;;  %v167_v54 = vpack.c.bf16 %v69_v48, %v62_v47  ;;  %v84_v56 = vld [vmem:[%s5828_s0 + $0x120] sm:$0xff]  ;;  %v4470_v39 = vld [vmem:[#allocation2 + $0x2e8] ss:$16 sps:$4 sm:$0xff]   ;;  %v118_v48 = vld [vmem:[%s5828_s0 + $0x230] sm:$0xff] }
  0x3b   :  { %1909 = vmatprep.subr.bf16.mxu1 %v4387_v57  ;;  %1860 = vmatprep.mubr.bf16.mxu1 %v4788_v0  ;;  %v4439_v57 = vld [vmem:[#allocation2 + $0x264] ss:$16 sps:$4 sm:$0xff]   ;;  %v175_v60 = vpack.c.bf16 %v84_v56, %v77_v55  ;;  %v4476_v47 = vld [vmem:[#allocation2 + $0x308] ss:$16 sps:$4 sm:$0xff]  }
  0x3c   :  { %v133_v56 = vld [vmem:[%s5828_s0 + $0x2a8] sm:$0xff] }
  0x3d   :  { %1460 = vmatpush1.bf16.msra.mxu0 %v4388_v59  ;;  %v4437_v59 = vld [vmem:[#allocation2 + $0x260] ss:$16 sps:$4 sm:$0xff]  }
  0x3e   :  { %1910 = vmatpush1.bf16.msra.mxu1 %v4385_v58  ;;  %1461 = vmatprep.subr.bf16.mxu0 %v4389_v62  ;;  %v4442_v58 = vld [vmem:[#allocation2 + $0x24c] ss:$16 sps:$4 sm:$0xff]   ;;  %v76_v62 = vld [vmem:[%s5828_s0 + $0xe0] sm:$0xff] }
  0x3f   :  { %1911 = vmatprep.subr.bf16.mxu1 %v4393_v63  ;;  %v83_v63 = vld [vmem:[%s5828_s0 + $0x118] sm:$0xff] }
  0x41   :  { %3767 = vmatmul.mubr.msk.bf16.gmra.mrb[20].mxu1 %vm1414_vm0, %v4916_v1  ;;  %1462 = vmatpush1.bf16.msra.mxu0 %v4394_v3  ;;  %v4448_v3 = vld [vmem:[#allocation2 + $0x26c] ss:$16 sps:$4 sm:$0xff]  }
  0x42   :  { %1912 = vmatpush1.bf16.msra.mxu1 %v4391_v2  ;;  %1463 = vmatprep.subr.bf16.mxu0 %v4395_v4  ;;  %v4445_v2 = vld [vmem:[#allocation2 + $0x284] ss:$16 sps:$4 sm:$0xff]   ;;  %v4443_v4 = vld [vmem:[#allocation2 + $0x280] ss:$16 sps:$4 sm:$0xff]  }
  0x43   :  { %1913 = vmatprep.subr.bf16.mxu1 %v4399_v5  ;;  %1870 = vmatprep.mubr.bf16.mxu1 %v4788_v0  ;;  %v174_v5 = vpack.c.bf16 %v83_v63, %v76_v62  ;;  %v4488_v62 = vld [vmem:[#allocation2 + $0x348] ss:$16 sps:$4 sm:$0xff]   ;;  %v132_v63 = vld [vmem:[%s5828_s0 + $0x2a0] sm:$0xff] }
  0x45   :  { %1464 = vmatpush1.bf16.msra.mxu0 %v4400_v7  ;;  %v98_v7 = vld [vmem:[%s5828_s0 + $0x190] sm:$0xff] }
  0x46   :  { %1914 = vmatpush1.bf16.msra.mxu1 %v4397_v6  ;;  %1465 = vmatprep.subr.bf16.mxu0 %v4401_v9  ;;  %v91_v6 = vld [vmem:[%s5828_s0 + $0x158] sm:$0xff] }
  0x47   :  { %1915 = vmatprep.subr.bf16.mxu1 %v4405_v14  ;;  %v4446_v9 = vld [vmem:[#allocation2 + $0x268] ss:$16 sps:$4 sm:$0xff]   ;;  %v182_v14 = vpack.c.bf16 %v98_v7, %v91_v6 }
  0x48   :  { %v4494_v6 = vld [vmem:[#allocation2 + $0x368] ss:$16 sps:$4 sm:$0xff]  }
  0x49   :  { %3768 = vmatmul.mubr.msk.bf16.gmra.mrb[24].mxu1 %vm1414_vm0, %v4933_v16  ;;  %1466 = vmatpush1.bf16.msra.mxu0 %v4406_v18  ;;  %v4457_v18 = vld [vmem:[#allocation2 + $0x2c4] ss:$16 sps:$4 sm:$0xff]  }
  0x4a   :  { %1916 = vmatpush1.bf16.msra.mxu1 %v4403_v17  ;;  %1467 = vmatprep.subr.bf16.mxu0 %v4407_v20  ;;  %v97_v17 = vld [vmem:[%s5828_s0 + $0x188] sm:$0xff] }
  0x4b   :  { %1917 = vmatprep.subr.bf16.mxu1 %v4411_v21  ;;  %1880 = vmatprep.mubr.bf16.mxu1 %v4788_v0  ;;  %v4460_v20 = vld [vmem:[#allocation2 + $0x2ac] ss:$16 sps:$4 sm:$0xff]  }
  0x4d   :  { %1468 = vmatpush1.bf16.msra.mxu0 %v4412_v23  ;;  %v112_v23 = vld [vmem:[%s5828_s0 + $0x200] sm:$0xff] }
  0x4e   :  { %1918 = vmatpush1.bf16.msra.mxu1 %v4409_v22  ;;  %1469 = vmatprep.subr.bf16.mxu0 %v4413_v24  ;;  %v105_v22 = vld [vmem:[%s5828_s0 + $0x1c8] sm:$0xff]  ;;  %v4455_v24 = vld [vmem:[#allocation2 + $0x2c0] ss:$16 sps:$4 sm:$0xff]  }
  0x4f   :  { %1919 = vmatprep.subr.bf16.mxu1 %v4417_v27  ;;  %v4466_v27 = vld [vmem:[#allocation2 + $0x2cc] ss:$16 sps:$4 sm:$0xff]   ;;  %v189_v32 = vpack.c.bf16 %v112_v23, %v105_v22  ;;  %v4503_v22 = vld [vmem:[#allocation2 + $0x3c0] ss:$16 sps:$4 sm:$0xff]  }
  0x51   :  { %3769 = vmatmul.mubr.msk.bf16.gmra.mrb[28].mxu1 %vm1414_vm0, %v4944_v29  ;;  %1470 = vmatpush1.bf16.msra.mxu0 %v4418_v30  ;;  %v4464_v30 = vld [vmem:[#allocation2 + $0x2c8] ss:$16 sps:$4 sm:$0xff]  }
  0x52   :  { %1920 = vmatpush1.bf16.msra.mxu1 %v4415_v28  ;;  %1552 = vmatprep.subr.bf16.mxu0 %v4421_v34  ;;  %v4461_v28 = vld [vmem:[#allocation2 + $0x2e0] ss:$16 sps:$4 sm:$0xff]   ;;  %v111_v34 = vld [vmem:[%s5828_s0 + $0x1f8] sm:$0xff] }
  0x53   :  { %1921 = vmatprep.subr.bf16.mxu1 %v4424_v35  ;;  %1923 = vmatprep.mubr.bf16.mxu1 %v161_v15  ;;  %v90_v15 = vld [vmem:[%s5828_s0 + $0x150] sm:$0xff] }
  0x54   :  { %1472 = vmatmul.mubr.bf16.vlgmr.msra.gmra.mrb[0].mxu0 %v160_v38  ;;  %v181_v21 = vpack.c.bf16 %v97_v17, %v90_v15  ;;  %v4469_v35 = vld [vmem:[#allocation2 + $0x304] ss:$16 sps:$4 sm:$0xff]   ;;  %v4500_v15 = vld [vmem:[#allocation2 + $0x388] ss:$16 sps:$4 sm:$0xff]  }
  0x55   :  { %1553 = vmatpush1.bf16.msra.mxu0 %v4419_v36  ;;  %1481 = vmatprep.mubr.bf16.mxu0 %v168_v44  ;;  %v4472_v36 = vld [vmem:[#allocation2 + $0x2ec] ss:$16 sps:$4 sm:$0xff]   ;;  %v146_v17 = vld [vmem:[%s5828_s0 + $0x310] sm:$0xff] }
  0x56   :  { %1922 = vmatpush1.bf16.msra.mxu1 %v4422_v37  ;;  %1554 = vmatprep.subr.bf16.mxu0 %v4427_v41  ;;  %v4467_v37 = vld [vmem:[#allocation2 + $0x300] ss:$16 sps:$4 sm:$0xff]  }
  0x57   :  { %2004 = vmatprep.subr.bf16.mxu1 %v4430_v43  ;;  %v126_v41 = vld [vmem:[%s5828_s0 + $0x270] sm:$0xff] }
  0x58   :  { %v4475_v43 = vld [vmem:[#allocation2 + $0x324] ss:$16 sps:$4 sm:$0xff]  }
  0x59   :  { %1924 = vmatmul.mubr.bf16.vlgmr.msra.gmra.mrb[32].mxu1 %v160_v38  ;;  %1555 = vmatpush1.bf16.msra.mxu0 %v4425_v45  ;;  %v188_v38 = vpack.c.bf16 %v111_v34, %v104_v33  ;;  %v4473_v45 = vld [vmem:[#allocation2 + $0x320] ss:$16 sps:$4 sm:$0xff]  }
  0x5a   :  { %2005 = vmatpush1.bf16.msra.mxu1 %v4428_v46  ;;  %1556 = vmatprep.subr.bf16.mxu0 %v4433_v49  ;;  %v196_v46 = vpack.c.bf16 %v126_v41, %v119_v40  ;;  %v125_v49 = vld [vmem:[%s5828_s0 + $0x268] sm:$0xff]  ;;  %v50_v34 = vld [vmem:[%s5828_s0 + $0x10] sm:$0xff]  ;;  %v72_v40 = vld [vmem:[%s5828_s0 + $0xc0] sm:$0xff] }
  0x5b   :  { %2006 = vmatprep.subr.bf16.mxu1 %v4436_v50  ;;  %1933 = vmatprep.mubr.bf16.mxu1 %v168_v44  ;;  %v4478_v44 = vld [vmem:[#allocation2 + $0x30c] ss:$16 sps:$4 sm:$0xff]   ;;  %v4481_v50 = vld [vmem:[#allocation2 + $0x344] ss:$16 sps:$4 sm:$0xff]   ;;  %v195_v55 = vpack.c.bf16 %v125_v49, %v118_v48  ;;  %v4515_v41 = vld [vmem:[#allocation2 + $0x400] ss:$16 sps:$4 sm:$0xff]  }
  0x5c   :  { %1482 = vmatmul.mubr.bf16.gmra.mrb[4].mxu0 %v167_v54  ;;  %v64_v49 = vld [vmem:[%s5828_s0 + $0x80] sm:$0xff] }
  0x5d   :  { %1557 = vmatpush1.bf16.msra.mxu0 %v4431_v51  ;;  %1491 = vmatprep.mubr.bf16.mxu0 %v175_v60  ;;  %v4484_v51 = vld [vmem:[#allocation2 + $0x32c] ss:$16 sps:$4 sm:$0xff]  }
  0x5e   :  { %2007 = vmatpush1.bf16.msra.mxu1 %v4434_v52  ;;  %1558 = vmatprep.subr.bf16.mxu0 %v4439_v57  ;;  %v4479_v52 = vld [vmem:[#allocation2 + $0x340] ss:$16 sps:$4 sm:$0xff]  }
  0x5f   :  { %2008 = vmatprep.subr.bf16.mxu1 %v4442_v58  ;;  %v140_v57 = vld [vmem:[%s5828_s0 + $0x2e0] sm:$0xff] }
  0x60   :  { %v4487_v58 = vld [vmem:[#allocation2 + $0x364] ss:$16 sps:$4 sm:$0xff]  }
  0x61   :  { %1934 = vmatmul.mubr.bf16.gmra.mrb[36].mxu1 %v167_v54  ;;  %1559 = vmatpush1.bf16.msra.mxu0 %v4437_v59  ;;  %v4482_v54 = vld [vmem:[#allocation2 + $0x328] ss:$16 sps:$4 sm:$0xff]   ;;  %v4490_v59 = vld [vmem:[#allocation2 + $0x34c] ss:$16 sps:$4 sm:$0xff]  }
  0x62   :  { %2009 = vmatpush1.bf16.msra.mxu1 %v4440_v61  ;;  %1560 = vmatprep.subr.bf16.mxu0 %v4445_v2  ;;  %v4485_v61 = vld [vmem:[#allocation2 + $0x360] ss:$16 sps:$4 sm:$0xff]   ;;  %v139_v2 = vld [vmem:[%s5828_s0 + $0x2d8] sm:$0xff] }
  0x63   :  { %2010 = vmatprep.subr.bf16.mxu1 %v4448_v3  ;;  %1943 = vmatprep.mubr.bf16.mxu1 %v175_v60  ;;  %v203_v60 = vpack.c.bf16 %v140_v57, %v133_v56  ;;  %v4493_v3 = vld [vmem:[#allocation2 + $0x384] ss:$16 sps:$4 sm:$0xff]   ;;  %v202_v7 = vpack.c.bf16 %v139_v2, %v132_v63  ;;  %v4530_v56 = vld [vmem:[#allocation2 + $0x428] ss:$16 sps:$4 sm:$0xff]  }
  0x64   :  { %1492 = vmatmul.mubr.bf16.gmra.mrb[8].mxu0 %v174_v5  ;;  %v79_v57 = vld [vmem:[%s5828_s0 + $0xf8] sm:$0xff]  ;;  %v78_v2 = vld [vmem:[%s5828_s0 + $0xf0] sm:$0xff] }
  0x65   :  { %1561 = vmatpush1.bf16.msra.mxu0 %v4443_v4  ;;  %1501 = vmatprep.mubr.bf16.mxu0 %v182_v14  ;;  %v4496_v4 = vld [vmem:[#allocation2 + $0x36c] ss:$16 sps:$4 sm:$0xff]   ;;  %v4536_v63 = vld [vmem:[#allocation2 + $0x448] ss:$16 sps:$4 sm:$0xff]  }
  0x66   :  { %2011 = vmatpush1.bf16.msra.mxu1 %v4446_v9  ;;  %1562 = vmatprep.subr.bf16.mxu0 %v4451_v10  ;;  %v147_v9 = vld [vmem:[%s5828_s0 + $0x318] sm:$0xff]  ;;  %v154_v10 = vld [vmem:[%s5828_s0 + $0x350] sm:$0xff] }
  0x67   :  { %2012 = vmatprep.subr.bf16.mxu1 %v4454_v11  ;;  %v4499_v11 = vld [vmem:[#allocation2 + $0x3a4] ss:$16 sps:$4 sm:$0xff]  }
  0x69   :  { %1944 = vmatmul.mubr.bf16.gmra.mrb[40].mxu1 %v174_v5  ;;  %1563 = vmatpush1.bf16.msra.mxu0 %v4449_v12  ;;  %v4491_v5 = vld [vmem:[#allocation2 + $0x380] ss:$16 sps:$4 sm:$0xff]   ;;  %v4502_v12 = vld [vmem:[#allocation2 + $0x38c] ss:$16 sps:$4 sm:$0xff]  }
  0x6a   :  { %2013 = vmatpush1.bf16.msra.mxu1 %v4452_v13  ;;  %1564 = vmatprep.subr.bf16.mxu0 %v4457_v18  ;;  %v4497_v13 = vld [vmem:[#allocation2 + $0x3a0] ss:$16 sps:$4 sm:$0xff]   ;;  %v153_v18 = vld [vmem:[%s5828_s0 + $0x348] sm:$0xff] }
  0x6b   :  { %2014 = vmatprep.subr.bf16.mxu1 %v4460_v20  ;;  %1953 = vmatprep.mubr.bf16.mxu1 %v182_v14  ;;  %v210_v14 = vpack.c.bf16 %v154_v10, %v147_v9  ;;  %v4505_v20 = vld [vmem:[#allocation2 + $0x3c4] ss:$16 sps:$4 sm:$0xff]   ;;  %v209_v23 = vpack.c.bf16 %v153_v18, %v146_v17  ;;  %v93_v10 = vld [vmem:[%s5828_s0 + $0x168] sm:$0xff] }
  0x6c   :  { %1502 = vmatmul.mubr.bf16.gmra.mrb[12].mxu0 %v181_v21  ;;  %v4548_v17 = vld [vmem:[#allocation2 + $0x488] ss:$16 sps:$4 sm:$0xff]   ;;  %v92_v18 = vld [vmem:[%s5828_s0 + $0x160] sm:$0xff] }
  0x6d   :  { %1565 = vmatpush1.bf16.msra.mxu0 %v4455_v24  ;;  %1511 = vmatprep.mubr.bf16.mxu0 %v189_v32  ;;  %v51_v24 = vld [vmem:[%s5828_s0 + $0x18] sm:$0xff] }
  0x6e   :  { %2015 = vmatpush1.bf16.msra.mxu1 %v4458_v25  ;;  %1566 = vmatprep.subr.bf16.mxu0 %v4463_v26  ;;  %v58_v25 = vld [vmem:[%s5828_s0 + $0x50] sm:$0xff]  ;;  %v4506_v26 = vld [vmem:[#allocation2 + $0x3a8] ss:$16 sps:$4 sm:$0xff]  }
  0x6f   :  { %2016 = vmatprep.subr.bf16.mxu1 %v4466_v27  ;;  %v4511_v27 = vld [vmem:[#allocation2 + $0x3e4] ss:$16 sps:$4 sm:$0xff]   ;;  %v163_v33 = vpack.c.bf16 %v58_v25, %v51_v24  ;;  %v4554_v24 = vld [vmem:[#allocation2 + $0x4a8] ss:$16 sps:$4 sm:$0xff]  }
  0x71   :  { %1954 = vmatmul.mubr.bf16.gmra.mrb[44].mxu1 %v181_v21  ;;  %1567 = vmatpush1.bf16.msra.mxu0 %v4461_v28  ;;  %v4508_v21 = vld [vmem:[#allocation2 + $0x3ac] ss:$16 sps:$4 sm:$0xff]  }
  0x72   :  { %2017 = vmatpush1.bf16.msra.mxu1 %v4464_v30  ;;  %1568 = vmatprep.subr.bf16.mxu0 %v4469_v35  ;;  %v4514_v28 = vld [vmem:[#allocation2 + $0x3cc] ss:$16 sps:$4 sm:$0xff]   ;;  %v4509_v30 = vld [vmem:[#allocation2 + $0x3e0] ss:$16 sps:$4 sm:$0xff]  }
  0x73   :  { %2018 = vmatprep.subr.bf16.mxu1 %v4472_v36  ;;  %1963 = vmatprep.mubr.bf16.mxu1 %v189_v32  ;;  %v4512_v32 = vld [vmem:[#allocation2 + $0x3c8] ss:$16 sps:$4 sm:$0xff]   ;;  %v4517_v36 = vld [vmem:[#allocation2 + $0x404] ss:$16 sps:$4 sm:$0xff]  }
  0x74   :  { %1512 = vmatmul.mubr.bf16.gmra.mrb[16].mxu0 %v188_v38  ;;  %v57_v35 = vld [vmem:[%s5828_s0 + $0x48] sm:$0xff] }
  0x75   :  { %1569 = vmatpush1.bf16.msra.mxu0 %v4467_v37  ;;  %1521 = vmatprep.mubr.bf16.mxu0 %v196_v46  ;;  %v4520_v37 = vld [vmem:[#allocation2 + $0x3ec] ss:$16 sps:$4 sm:$0xff]  }
  0x76   :  { %2019 = vmatpush1.bf16.msra.mxu1 %v4470_v39  ;;  %1570 = vmatprep.subr.bf16.mxu0 %v4475_v43  ;;  %v65_v39 = vld [vmem:[%s5828_s0 + $0x88] sm:$0xff] }
  0x77   :  { %2020 = vmatprep.subr.bf16.mxu1 %v4478_v44  ;;  %v4518_v43 = vld [vmem:[#allocation2 + $0x3e8] ss:$16 sps:$4 sm:$0xff]   ;;  %v4523_v44 = vld [vmem:[#allocation2 + $0x424] ss:$16 sps:$4 sm:$0xff]   ;;  %v170_v48 = vpack.c.bf16 %v72_v40, %v65_v39 }
  0x78   :  { %v121_v40 = vld [vmem:[%s5828_s0 + $0x248] sm:$0xff] }
  0x79   :  { %1964 = vmatmul.mubr.bf16.gmra.mrb[48].mxu1 %v188_v38  ;;  %1571 = vmatpush1.bf16.msra.mxu0 %v4473_v45  ;;  %v162_v38 = vpack.c.bf16 %v57_v35, %v50_v34  ;;  %v4526_v45 = vld [vmem:[#allocation2 + $0x40c] ss:$16 sps:$4 sm:$0xff]   ;;  %v4560_v34 = vld [vmem:[#allocation2 + $0x4c8] ss:$16 sps:$4 sm:$0xff]   ;;  %v106_v35 = vld [vmem:[%s5828_s0 + $0x1d0] sm:$0xff] }
  0x7a   :  { %2021 = vmatpush1.bf16.msra.mxu1 %v4476_v47  ;;  %1572 = vmatprep.subr.bf16.mxu0 %v4481_v50  ;;  %v4524_v47 = vld [vmem:[#allocation2 + $0x408] ss:$16 sps:$4 sm:$0xff]  }
  0x7b   :  { %2022 = vmatprep.subr.bf16.mxu1 %v4484_v51  ;;  %1973 = vmatprep.mubr.bf16.mxu1 %v196_v46  ;;  %v4521_v46 = vld [vmem:[#allocation2 + $0x420] ss:$16 sps:$4 sm:$0xff]   ;;  %v71_v50 = vld [vmem:[%s5828_s0 + $0xb8] sm:$0xff]  ;;  %v4529_v51 = vld [vmem:[#allocation2 + $0x444] ss:$16 sps:$4 sm:$0xff]  }
  0x7c   :  { %1522 = vmatmul.mubr.bf16.gmra.mrb[20].mxu0 %v195_v55 }
  0x7d   :  { %1573 = vmatpush1.bf16.msra.mxu0 %v4479_v52  ;;  %1531 = vmatprep.mubr.bf16.mxu0 %v203_v60  ;;  %v4532_v52 = vld [vmem:[#allocation2 + $0x42c] ss:$16 sps:$4 sm:$0xff]  }
  0x7e   :  { %2023 = vmatpush1.bf16.msra.mxu1 %v4482_v54  ;;  %1574 = vmatprep.subr.bf16.mxu0 %v4487_v58  ;;  %v4527_v54 = vld [vmem:[#allocation2 + $0x440] ss:$16 sps:$4 sm:$0xff]  }
  0x7f   :  { %2024 = vmatprep.subr.bf16.mxu1 %v4490_v59  ;;  %v86_v58 = vld [vmem:[%s5828_s0 + $0x130] sm:$0xff] }
  0x80   :  { %v4535_v59 = vld [vmem:[#allocation2 + $0x464] ss:$16 sps:$4 sm:$0xff]  }
  0x81   :  { %1974 = vmatmul.mubr.bf16.gmra.mrb[52].mxu1 %v195_v55  ;;  %1575 = vmatpush1.bf16.msra.mxu0 %v4485_v61  ;;  %v169_v55 = vpack.c.bf16 %v71_v50, %v64_v49  ;;  %v4533_v61 = vld [vmem:[#allocation2 + $0x460] ss:$16 sps:$4 sm:$0xff]   ;;  %v4572_v49 = vld [vmem:[#allocation2 + $0x508] ss:$16 sps:$4 sm:$0xff]  }
  0x82   :  { %2025 = vmatpush1.bf16.msra.mxu1 %v4488_v62  ;;  %1576 = vmatprep.subr.bf16.mxu0 %v4493_v3  ;;  %v177_v62 = vpack.c.bf16 %v86_v58, %v79_v57  ;;  %v85_v3 = vld [vmem:[%s5828_s0 + $0x128] sm:$0xff]  ;;  %v120_v50 = vld [vmem:[%s5828_s0 + $0x240] sm:$0xff] }
  0x83   :  { %2026 = vmatprep.subr.bf16.mxu1 %v4496_v4  ;;  %1983 = vmatprep.mubr.bf16.mxu1 %v203_v60  ;;  %v4538_v60 = vld [vmem:[#allocation2 + $0x44c] ss:$16 sps:$4 sm:$0xff]   ;;  %v4541_v4 = vld [vmem:[#allocation2 + $0x484] ss:$16 sps:$4 sm:$0xff]   ;;  %v176_v9 = vpack.c.bf16 %v85_v3, %v78_v2 }
  0x84   :  { %1532 = vmatmul.mubr.bf16.gmra.mrb[24].mxu0 %v202_v7  ;;  %v4583_v58 = vld [vmem:[#allocation2 + $0x564] ss:$16 sps:$4 sm:$0xff]  }
  0x85   :  { %1577 = vmatpush1.bf16.msra.mxu0 %v4491_v5  ;;  %1541 = vmatprep.mubr.bf16.mxu0 %v210_v14  ;;  %v4544_v5 = vld [vmem:[#allocation2 + $0x46c] ss:$16 sps:$4 sm:$0xff]   ;;  %v134_v3 = vld [vmem:[%s5828_s0 + $0x2b0] sm:$0xff] }
  0x86   :  { %2027 = vmatpush1.bf16.msra.mxu1 %v4494_v6  ;;  %1578 = vmatprep.subr.bf16.mxu0 %v4499_v11  ;;  %v4539_v6 = vld [vmem:[#allocation2 + $0x480] ss:$16 sps:$4 sm:$0xff]  }
  0x87   :  { %2028 = vmatprep.subr.bf16.mxu1 %v4502_v12  ;;  %v100_v11 = vld [vmem:[%s5828_s0 + $0x1a0] sm:$0xff] }
  0x88   :  { %v4547_v12 = vld [vmem:[#allocation2 + $0x4a4] ss:$16 sps:$4 sm:$0xff]  }
  0x89   :  { %1984 = vmatmul.mubr.bf16.gmra.mrb[56].mxu1 %v202_v7  ;;  %1579 = vmatpush1.bf16.msra.mxu0 %v4497_v13  ;;  %v4542_v7 = vld [vmem:[#allocation2 + $0x468] ss:$16 sps:$4 sm:$0xff]   ;;  %v4550_v13 = vld [vmem:[#allocation2 + $0x48c] ss:$16 sps:$4 sm:$0xff]  }
  0x8a   :  { %2029 = vmatpush1.bf16.msra.mxu1 %v4500_v15  ;;  %1580 = vmatprep.subr.bf16.mxu0 %v4505_v20  ;;  %v4545_v15 = vld [vmem:[#allocation2 + $0x4a0] ss:$16 sps:$4 sm:$0xff]   ;;  %v99_v20 = vld [vmem:[%s5828_s0 + $0x198] sm:$0xff] }
  0x8b   :  { %2030 = vmatprep.subr.bf16.mxu1 %v4508_v21  ;;  %1993 = vmatprep.mubr.bf16.mxu1 %v210_v14  ;;  %v184_v14 = vpack.c.bf16 %v100_v11, %v93_v10  ;;  %v4553_v21 = vld [vmem:[#allocation2 + $0x4c4] ss:$16 sps:$4 sm:$0xff]   ;;  %v183_v25 = vpack.c.bf16 %v99_v20, %v92_v18  ;;  %v4587_v10 = vld [vmem:[#allocation2 + $0x580] ss:$16 sps:$4 sm:$0xff]   ;;  %v4590_v11 = vld [vmem:[#allocation2 + $0x568] ss:$16 sps:$4 sm:$0xff]  }
  0x8c   :  { %1542 = vmatmul.mubr.bf16.gmra.mrb[28].mxu0 %v209_v23  ;;  %v148_v20 = vld [vmem:[%s5828_s0 + $0x320] sm:$0xff] }
  0x8d   :  { %1581 = vmatpush1.bf16.msra.mxu0 %v4503_v22  ;;  %1584 = vmatprep.mubr.bf16.mxu0 %v163_v33  ;;  %v4556_v22 = vld [vmem:[#allocation2 + $0x4ac] ss:$16 sps:$4 sm:$0xff]  }
  0x8e   :  { %2031 = vmatpush1.bf16.msra.mxu1 %v4506_v26  ;;  %1582 = vmatprep.subr.bf16.mxu0 %v4511_v27  ;;  %v107_v26 = vld [vmem:[%s5828_s0 + $0x1d8] sm:$0xff]  ;;  %v114_v27 = vld [vmem:[%s5828_s0 + $0x210] sm:$0xff] }
  0x8f   :  { %2032 = vmatprep.subr.bf16.mxu1 %v4514_v28  ;;  %v4559_v28 = vld [vmem:[#allocation2 + $0x4e4] ss:$16 sps:$4 sm:$0xff]  }
  0x91   :  { %1994 = vmatmul.mubr.bf16.gmra.mrb[60].mxu1 %v209_v23  ;;  %1583 = vmatpush1.bf16.msra.mxu0 %v4509_v30  ;;  %v4551_v23 = vld [vmem:[#allocation2 + $0x4c0] ss:$16 sps:$4 sm:$0xff]   ;;  %v4562_v30 = vld [vmem:[#allocation2 + $0x4cc] ss:$16 sps:$4 sm:$0xff]  }
  0x92   :  { %2033 = vmatpush1.bf16.msra.mxu1 %v4512_v32  ;;  %1665 = vmatprep.subr.bf16.mxu0 %v4517_v36  ;;  %v4557_v32 = vld [vmem:[#allocation2 + $0x4e0] ss:$16 sps:$4 sm:$0xff]   ;;  %v113_v36 = vld [vmem:[%s5828_s0 + $0x208] sm:$0xff] }
  0x93   :  { %2034 = vmatprep.subr.bf16.mxu1 %v4520_v37  ;;  %2036 = vmatprep.mubr.bf16.mxu1 %v163_v33  ;;  %v191_v33 = vpack.c.bf16 %v114_v27, %v107_v26  ;;  %v4565_v37 = vld [vmem:[#allocation2 + $0x504] ss:$16 sps:$4 sm:$0xff]   ;;  %v190_v39 = vpack.c.bf16 %v113_v36, %v106_v35  ;;  %v4599_v26 = vld [vmem:[#allocation2 + $0x5c0] ss:$16 sps:$4 sm:$0xff]   ;;  %v4602_v27 = vld [vmem:[#allocation2 + $0x5a8] ss:$16 sps:$4 sm:$0xff]  }
  0x94   :  { %1585 = vmatmul.mubr.bf16.vlgmr.msra.gmra.mrb[0].mxu0 %v162_v38  ;;  %v52_v36 = vld [vmem:[%s5828_s0 + $0x20] sm:$0xff] }
  0x95   :  { %1666 = vmatpush1.bf16.msra.mxu0 %v4515_v41  ;;  %1594 = vmatprep.mubr.bf16.mxu0 %v170_v48  ;;  %v128_v41 = vld [vmem:[%s5828_s0 + $0x280] sm:$0xff] }
  0x96   :  { %2035 = vmatpush1.bf16.msra.mxu1 %v4518_v43  ;;  %1667 = vmatprep.subr.bf16.mxu0 %v4523_v44  ;;  %v4563_v43 = vld [vmem:[#allocation2 + $0x500] ss:$16 sps:$4 sm:$0xff]   ;;  %v4566_v44 = vld [vmem:[#allocation2 + $0x4e8] ss:$16 sps:$4 sm:$0xff]  }
  0x97   :  { %2117 = vmatprep.subr.bf16.mxu1 %v4526_v45  ;;  %v4571_v45 = vld [vmem:[#allocation2 + $0x524] ss:$16 sps:$4 sm:$0xff]  }
  0x99   :  { %2037 = vmatmul.mubr.bf16.vlgmr.msra.gmra.mrb[32].mxu1 %v162_v38  ;;  %1668 = vmatpush1.bf16.msra.mxu0 %v4521_v46  ;;  %v4568_v38 = vld [vmem:[#allocation2 + $0x4ec] ss:$16 sps:$4 sm:$0xff]  }
  0x9a   :  { %2118 = vmatpush1.bf16.msra.mxu1 %v4524_v47  ;;  %1669 = vmatprep.subr.bf16.mxu0 %v4529_v51  ;;  %v4574_v46 = vld [vmem:[#allocation2 + $0x50c] ss:$16 sps:$4 sm:$0xff]   ;;  %v198_v47 = vpack.c.bf16 %v128_v41, %v121_v40  ;;  %v74_v40 = vld [vmem:[%s5828_s0 + $0xd0] sm:$0xff] }
  0x9b   :  { %2119 = vmatprep.subr.bf16.mxu1 %v4532_v52  ;;  %2046 = vmatprep.mubr.bf16.mxu1 %v170_v48  ;;  %v4569_v48 = vld [vmem:[#allocation2 + $0x520] ss:$16 sps:$4 sm:$0xff]   ;;  %v127_v51 = vld [vmem:[%s5828_s0 + $0x278] sm:$0xff]  ;;  %v4577_v52 = vld [vmem:[#allocation2 + $0x544] ss:$16 sps:$4 sm:$0xff]  }
  0x9c   :  { %1595 = vmatmul.mubr.bf16.gmra.mrb[4].mxu0 %v169_v55  ;;  %v197_v57 = vpack.c.bf16 %v127_v51, %v120_v50  ;;  %v66_v50 = vld [vmem:[%s5828_s0 + $0x90] sm:$0xff]  ;;  %v73_v51 = vld [vmem:[%s5828_s0 + $0xc8] sm:$0xff] }
  0x9d   :  { %1670 = vmatpush1.bf16.msra.mxu0 %v4527_v54  ;;  %1604 = vmatprep.mubr.bf16.mxu0 %v177_v62  ;;  %v4580_v54 = vld [vmem:[#allocation2 + $0x52c] ss:$16 sps:$4 sm:$0xff]  }
  0x9e   :  { %2120 = vmatpush1.bf16.msra.mxu1 %v4530_v56  ;;  %1671 = vmatprep.subr.bf16.mxu0 %v4535_v59  ;;  %v4578_v56 = vld [vmem:[#allocation2 + $0x528] ss:$16 sps:$4 sm:$0xff]   ;;  %v4586_v59 = vld [vmem:[#allocation2 + $0x54c] ss:$16 sps:$4 sm:$0xff]  }
  0x9f   :  { %2121 = vmatprep.subr.bf16.mxu1 %v4538_v60  ;;  %v135_v60 = vld [vmem:[%s5828_s0 + $0x2b8] sm:$0xff] }
  0xa1   :  { %2047 = vmatmul.mubr.bf16.gmra.mrb[36].mxu1 %v169_v55  ;;  %1672 = vmatpush1.bf16.msra.mxu0 %v4533_v61  ;;  %v4575_v55 = vld [vmem:[#allocation2 + $0x540] ss:$16 sps:$4 sm:$0xff]  }
  0xa2   :  { %2122 = vmatpush1.bf16.msra.mxu1 %v4536_v63  ;;  %1673 = vmatprep.subr.bf16.mxu0 %v4541_v4  ;;  %v142_v61 = vld [vmem:[%s5828_s0 + $0x2f0] sm:$0xff]  ;;  %v4584_v63 = vld [vmem:[#allocation2 + $0x548] ss:$16 sps:$4 sm:$0xff]  }
  0xa3   :  { %2123 = vmatprep.subr.bf16.mxu1 %v4544_v5  ;;  %2056 = vmatprep.mubr.bf16.mxu1 %v177_v62  ;;  %v4581_v62 = vld [vmem:[#allocation2 + $0x560] ss:$16 sps:$4 sm:$0xff]   ;;  %v205_v2 = vpack.c.bf16 %v142_v61, %v135_v60  ;;  %v141_v4 = vld [vmem:[%s5828_s0 + $0x2e8] sm:$0xff]  ;;  %v4589_v5 = vld [vmem:[#allocation2 + $0x584] ss:$16 sps:$4 sm:$0xff]  }
  0xa4   :  { %1605 = vmatmul.mubr.bf16.gmra.mrb[8].mxu0 %v176_v9  ;;  %v80_v60 = vld [vmem:[%s5828_s0 + $0x100] sm:$0xff]  ;;  %v87_v61 = vld [vmem:[%s5828_s0 + $0x138] sm:$0xff] }
  0xa5   :  { %1674 = vmatpush1.bf16.msra.mxu0 %v4539_v6  ;;  %1614 = vmatprep.mubr.bf16.mxu0 %v184_v14  ;;  %v4592_v6 = vld [vmem:[#allocation2 + $0x56c] ss:$16 sps:$4 sm:$0xff]  }
  0xa6   :  { %2124 = vmatpush1.bf16.msra.mxu1 %v4542_v7  ;;  %1675 = vmatprep.subr.bf16.mxu0 %v4547_v12  ;;  %v149_v7 = vld [vmem:[%s5828_s0 + $0x328] sm:$0xff]  ;;  %v204_v12 = vpack.c.bf16 %v141_v4, %v134_v3  ;;  %v4626_v3 = vld [vmem:[%s5831_s3 + $0x30] ss:$8 sps:$4 sm:$0xff]  }
  0xa7   :  { %2125 = vmatprep.subr.bf16.mxu1 %v4550_v13  ;;  %v4595_v13 = vld [vmem:[#allocation2 + $0x5a4] ss:$16 sps:$4 sm:$0xff]  }
  0xa8   :  { %v4631_v4 = vld [vmem:[%s5831_s3 + $0x44] ss:$8 sps:$4 sm:$0xff]  }
  0xa9   :  { %2057 = vmatmul.mubr.bf16.gmra.mrb[40].mxu1 %v176_v9  ;;  %1676 = vmatpush1.bf16.msra.mxu0 %v4545_v15  ;;  %v156_v9 = vld [vmem:[%s5828_s0 + $0x360] sm:$0xff] }
  0xaa   :  { %2126 = vmatpush1.bf16.msra.mxu1 %v4548_v17  ;;  %1677 = vmatprep.subr.bf16.mxu0 %v4553_v21  ;;  %v4593_v15 = vld [vmem:[#allocation2 + $0x5a0] ss:$16 sps:$4 sm:$0xff]   ;;  %v4596_v17 = vld [vmem:[#allocation2 + $0x588] ss:$16 sps:$4 sm:$0xff]   ;;  %v212_v18 = vpack.c.bf16 %v156_v9, %v149_v7  ;;  %v4634_v9 = vld [vmem:[%s5831_s3 + $0x54] ss:$8 sps:$4 sm:$0xff]  }
  0xab   :  { %2127 = vmatprep.subr.bf16.mxu1 %v4556_v22  ;;  %2066 = vmatprep.mubr.bf16.mxu1 %v184_v14  ;;  %v4598_v14 = vld [vmem:[#allocation2 + $0x58c] ss:$16 sps:$4 sm:$0xff]   ;;  %v4601_v22 = vld [vmem:[#allocation2 + $0x5c4] ss:$16 sps:$4 sm:$0xff]  }
  0xac   :  { %1615 = vmatmul.mubr.bf16.gmra.mrb[12].mxu0 %v183_v25  ;;  %v155_v21 = vld [vmem:[%s5828_s0 + $0x358] sm:$0xff] }
  0xad   :  { %1678 = vmatpush1.bf16.msra.mxu0 %v4551_v23  ;;  %1624 = vmatprep.mubr.bf16.mxu0 %v191_v33  ;;  %v4604_v23 = vld [vmem:[#allocation2 + $0x5ac] ss:$16 sps:$4 sm:$0xff]  }
  0xae   :  { %2128 = vmatpush1.bf16.msra.mxu1 %v4554_v24  ;;  %1679 = vmatprep.subr.bf16.mxu0 %v4559_v28  ;;  %v53_v24 = vld [vmem:[%s5828_s0 + $0x28] sm:$0xff]  ;;  %v211_v28 = vpack.c.bf16 %v155_v21, %v148_v20 }
  0xaf   :  { %2129 = vmatprep.subr.bf16.mxu1 %v4562_v30  ;;  %v4607_v30 = vld [vmem:[#allocation2 + $0x5e4] ss:$16 sps:$4 sm:$0xff]   ;;  %v4635_v20 = vld [vmem:[%s5831_s3 + $0x60] ss:$8 sps:$4 sm:$0xff]  }
  0xb1   :  { %2067 = vmatmul.mubr.bf16.gmra.mrb[44].mxu1 %v183_v25  ;;  %1680 = vmatpush1.bf16.msra.mxu0 %v4557_v32  ;;  %v60_v25 = vld [vmem:[%s5828_s0 + $0x60] sm:$0xff]  ;;  %v4610_v32 = vld [vmem:[#allocation2 + $0x5cc] ss:$16 sps:$4 sm:$0xff]  }
  0xb2   :  { %2130 = vmatpush1.bf16.msra.mxu1 %v4560_v34  ;;  %1681 = vmatprep.subr.bf16.mxu0 %v4565_v37  ;;  %v4608_v34 = vld [vmem:[#allocation2 + $0x5c8] ss:$16 sps:$4 sm:$0xff]   ;;  %v165_v35 = vpack.c.bf16 %v60_v25, %v53_v24  ;;  %v108_v25 = vld [vmem:[%s5828_s0 + $0x1e0] sm:$0xff] }
  0xb3   :  { %2131 = vmatprep.subr.bf16.mxu1 %v4568_v38  ;;  %2076 = vmatprep.mubr.bf16.mxu1 %v191_v33  ;;  %v4605_v33 = vld [vmem:[#allocation2 + $0x5e0] ss:$16 sps:$4 sm:$0xff]   ;;  %v59_v37 = vld [vmem:[%s5828_s0 + $0x58] sm:$0xff] }
  0xb4   :  { %1625 = vmatmul.mubr.bf16.gmra.mrb[16].mxu0 %v190_v39  ;;  %v4613_v38 = vld [vmem:[#allocation2 + $0x5ec] ss:$16 sps:$4 sm:$0xff]   ;;  %v164_v41 = vpack.c.bf16 %v59_v37, %v52_v36  ;;  %v4641_v36 = vld [vmem:[%s5831_s3 + $0x80] ss:$8 sps:$4 sm:$0xff]  }
  0xb5   :  { %1682 = vmatpush1.bf16.msra.mxu0 %v4563_v43  ;;  %1634 = vmatprep.mubr.bf16.mxu0 %v198_v47  ;;  %v4619_v43 = vld [vmem:[%s5831_s3 + $0x4] ss:$8 sps:$4 sm:$0xff]  }
  0xb6   :  { %2132 = vmatpush1.bf16.msra.mxu1 %v4566_v44  ;;  %1683 = vmatprep.subr.bf16.mxu0 %v4571_v45  ;;  %v4611_v44 = vld [vmem:[#allocation2 + $0x5e8] ss:$16 sps:$4 sm:$0xff]  }
  0xb7   :  { %2133 = vmatprep.subr.bf16.mxu1 %v4574_v46  ;;  %v4616_v46 = vld [vmem:[#allocation2 + $0x60c] ss:$16 sps:$4 sm:$0xff]  }
  0xb9   :  { %2077 = vmatmul.mubr.bf16.gmra.mrb[48].mxu1 %v190_v39  ;;  %1684 = vmatpush1.bf16.msra.mxu0 %v4569_v48  ;;  %v67_v39 = vld [vmem:[%s5828_s0 + $0x98] sm:$0xff] }
  0xba   :  { %2134 = vmatpush1.bf16.msra.mxu1 %v4572_v49  ;;  %1685 = vmatprep.subr.bf16.mxu0 %v4577_v52  ;;  %v172_v45 = vpack.c.bf16 %v74_v40, %v67_v39  ;;  %v4622_v48 = vld [vmem:[%s5831_s3 + $0x14] ss:$8 sps:$4 sm:$0xff]   ;;  %v4614_v49 = vld [vmem:[#allocation2 + $0x608] ss:$16 sps:$4 sm:$0xff]  }
  0xbb   :  { %2135 = vmatprep.subr.bf16.mxu1 %v4580_v54  ;;  %2086 = vmatprep.mubr.bf16.mxu1 %v198_v47  ;;  %v4617_v47 = vld [vmem:[%s5831_s3] ss:$8 sps:$4 sm:$0xff]  }
  0xbc   :  { %1635 = vmatmul.mubr.bf16.gmra.mrb[20].mxu0 %v197_v57  ;;  %v81_v52 = vld [vmem:[%s5828_s0 + $0x108] sm:$0xff]  ;;  %v88_v54 = vld [vmem:[%s5828_s0 + $0x140] sm:$0xff] }
  0xbd   :  { %1686 = vmatpush1.bf16.msra.mxu0 %v4575_v55  ;;  %1644 = vmatprep.mubr.bf16.mxu0 %v205_v2  ;;  %v4620_v55 = vld [vmem:[%s5831_s3 + $0x10] ss:$8 sps:$4 sm:$0xff]  }
  0xbe   :  { %2136 = vmatpush1.bf16.msra.mxu1 %v4578_v56  ;;  %1687 = vmatprep.subr.bf16.mxu0 %v4583_v58  ;;  %v4625_v56 = vld [vmem:[%s5831_s3 + $0x24] ss:$8 sps:$4 sm:$0xff]   ;;  %v179_v58 = vpack.c.bf16 %v88_v54, %v81_v52  ;;  %v4652_v54 = vld [vmem:[%s5831_s3 + $0xb4] ss:$8 sps:$4 sm:$0xff]  }
  0xbf   :  { %2137 = vmatprep.subr.bf16.mxu1 %v4586_v59  ;;  %v4623_v59 = vld [vmem:[%s5831_s3 + $0x20] ss:$8 sps:$4 sm:$0xff]  }
  0xc1   :  { %2087 = vmatmul.mubr.bf16.gmra.mrb[52].mxu1 %v197_v57  ;;  %1688 = vmatpush1.bf16.msra.mxu0 %v4581_v62  ;;  %v171_v57 = vpack.c.bf16 %v73_v51, %v66_v50  ;;  %v4628_v62 = vld [vmem:[%s5831_s3 + $0x34] ss:$8 sps:$4 sm:$0xff]   ;;  %v4647_v51 = vld [vmem:[%s5831_s3 + $0xa0] ss:$8 sps:$4 sm:$0xff]  }
  0xc2   :  { %2138 = vmatpush1.bf16.msra.mxu1 %v4584_v63  ;;  %1689 = vmatprep.subr.bf16.mxu0 %v4589_v5  ;;  %v95_v63 = vld [vmem:[%s5828_s0 + $0x178] sm:$0xff]  ;;  %v178_v5 = vpack.c.bf16 %v87_v61, %v80_v60  ;;  %v158_v61 = vld [vmem:[%s5828_s0 + $0x370] sm:$0xff] }
  0xc3   :  { %2139 = vmatprep.subr.bf16.mxu1 %v4592_v6  ;;  %2096 = vmatprep.mubr.bf16.mxu1 %v205_v2  ;;  %v102_v2 = vld [vmem:[%s5828_s0 + $0x1b0] sm:$0xff]  ;;  %v4629_v6 = vld [vmem:[%s5831_s3 + $0x40] ss:$8 sps:$4 sm:$0xff]   ;;  %v151_v60 = vld [vmem:[%s5828_s0 + $0x338] sm:$0xff] }
  0xc4   :  { %1645 = vmatmul.mubr.bf16.gmra.mrb[24].mxu0 %v204_v12  ;;  %v186_v7 = vpack.c.bf16 %v102_v2, %v95_v63  ;;  %v4655_v63 = vld [vmem:[%s5831_s3 + $0xc4] ss:$8 sps:$4 sm:$0xff]  }
  0xc5   :  { %1690 = vmatpush1.bf16.msra.mxu0 %v4587_v10  ;;  %1654 = vmatprep.mubr.bf16.mxu0 %v212_v18  ;;  %v94_v10 = vld [vmem:[%s5828_s0 + $0x170] sm:$0xff] }
  0xc6   :  { %2140 = vmatpush1.bf16.msra.mxu1 %v4590_v11  ;;  %1691 = vmatprep.subr.bf16.mxu0 %v4595_v13  ;;  %v101_v11 = vld [vmem:[%s5828_s0 + $0x1a8] sm:$0xff]  ;;  %v116_v13 = vld [vmem:[%s5828_s0 + $0x220] sm:$0xff] }
  0xc7   :  { %2141 = vmatprep.subr.bf16.mxu1 %v4598_v14  ;;  %v4632_v14 = vld [vmem:[%s5831_s3 + $0x50] ss:$8 sps:$4 sm:$0xff]  }
  0xc9   :  { %2097 = vmatmul.mubr.bf16.gmra.mrb[56].mxu1 %v204_v12  ;;  %1692 = vmatpush1.bf16.msra.mxu0 %v4593_v15  ;;  %v109_v12 = vld [vmem:[%s5828_s0 + $0x1e8] sm:$0xff] }
  0xca   :  { %2142 = vmatpush1.bf16.msra.mxu1 %v4596_v17  ;;  %1693 = vmatprep.subr.bf16.mxu0 %v4601_v22  ;;  %v4637_v15 = vld [vmem:[%s5831_s3 + $0x64] ss:$8 sps:$4 sm:$0xff]   ;;  %v185_v17 = vpack.c.bf16 %v101_v11, %v94_v10  ;;  %v4640_v22 = vld [vmem:[%s5831_s3 + $0x74] ss:$8 sps:$4 sm:$0xff]  }
  0xcb   :  { %2143 = vmatprep.subr.bf16.mxu1 %v4604_v23  ;;  %2106 = vmatprep.mubr.bf16.mxu1 %v212_v18  ;;  %v193_v18 = vpack.c.bf16 %v116_v13, %v109_v12  ;;  %v157_v10 = vld [vmem:[%s5828_s0 + $0x368] sm:$0xff] }
  0xcc   :  { %1655 = vmatmul.mubr.bf16.gmra.mrb[28].mxu0 %v211_v28 }
  0xcd   :  { %1694 = vmatpush1.bf16.msra.mxu0 %v4599_v26  ;;  %1697 = vmatprep.mubr.bf16.mxu0 %v165_v35  ;;  %v115_v26 = vld [vmem:[%s5828_s0 + $0x218] sm:$0xff] }
  0xce   :  { %2144 = vmatpush1.bf16.msra.mxu1 %v4602_v27  ;;  %1695 = vmatprep.subr.bf16.mxu0 %v4607_v30  ;;  %v130_v30 = vld [vmem:[%s5828_s0 + $0x290] sm:$0xff] }
  0xcf   :  { %2145 = vmatprep.subr.bf16.mxu1 %v4610_v32  ;;  %v4638_v32 = vld [vmem:[%s5831_s3 + $0x70] ss:$8 sps:$4 sm:$0xff]  }
  0xd1   :  { %2107 = vmatmul.mubr.bf16.gmra.mrb[60].mxu1 %v211_v28  ;;  %1696 = vmatpush1.bf16.msra.mxu0 %v4605_v33  ;;  %v123_v28 = vld [vmem:[%s5828_s0 + $0x258] sm:$0xff]  ;;  %v4643_v33 = vld [vmem:[%s5831_s3 + $0x84] ss:$8 sps:$4 sm:$0xff]  }
  0xd2   :  { %2146 = vmatpush1.bf16.msra.mxu1 %v4608_v34  ;;  %2149 = vmatprep.mubr.bf16.mxu1 %v165_v35  ;;  %v192_v34 = vpack.c.bf16 %v115_v26, %v108_v25  ;;  %v200_v35 = vpack.c.bf16 %v130_v30, %v123_v28 }
  0xd3   :  { %2147 = vmatprep.subr.bf16.mxu1 %v4613_v38  ;;  %2835 = vmatprep.subr.bf16.mxu0 %v4619_v43  ;;  %v4646_v38 = vld [vmem:[%s5831_s3 + $0x94] ss:$8 sps:$4 sm:$0xff]   ;;  %v129_v43 = vld [vmem:[%s5828_s0 + $0x288] sm:$0xff] }
  0xd4   :  { %1698 = vmatmul.mubr.bf16.vlgmr.msra.gmra.mrb[0].mxu0 %v164_v41 }
  0xd5   :  { %1707 = vmatprep.mubr.bf16.mxu0 %v172_v45  ;;  %2836 = vmatpush1.bf16.msra.mxu0 %v4617_v47  ;;  %v4644_v47 = vld [vmem:[%s5831_s3 + $0x90] ss:$8 sps:$4 sm:$0xff]  }
  0xd6   :  { %2148 = vmatpush1.bf16.msra.mxu1 %v4611_v44  ;;  %2837 = vmatprep.subr.bf16.mxu0 %v4622_v48  ;;  %v4649_v48 = vld [vmem:[%s5831_s3 + $0xa4] ss:$8 sps:$4 sm:$0xff]  }
  0xd7   :  { %2230 = vmatprep.subr.bf16.mxu1 %v4616_v46  ;;  %v144_v46 = vld [vmem:[%s5828_s0 + $0x300] sm:$0xff] }
  0xd9   :  { %2150 = vmatmul.mubr.bf16.vlgmr.msra.gmra.mrb[32].mxu1 %v164_v41  ;;  %2838 = vmatpush1.bf16.msra.mxu0 %v4620_v55  ;;  %v122_v41 = vld [vmem:[%s5828_s0 + $0x250] sm:$0xff] }
  0xda   :  { %2231 = vmatpush1.bf16.msra.mxu1 %v4614_v49  ;;  %2159 = vmatprep.mubr.bf16.mxu1 %v172_v45  ;;  %v137_v45 = vld [vmem:[%s5828_s0 + $0x2c8] sm:$0xff]  ;;  %v199_v49 = vpack.c.bf16 %v129_v43, %v122_v41  ;;  %v4664_v43 = vld [vmem:[%s5831_s3 + $0xf4] ss:$8 sps:$4 sm:$0xff]  }
  0xdb   :  { %2839 = vmatprep.subr.bf16.mxu0 %v4625_v56  ;;  %v207_v50 = vpack.c.bf16 %v144_v46, %v137_v45  ;;  %v4659_v41 = vld [vmem:[%s5831_s3 + $0xe0] ss:$8 sps:$4 sm:$0xff]   ;;  %v4667_v45 = vld [vmem:[%s5831_s3 + $0x104] ss:$8 sps:$4 sm:$0xff]  }
  0xdc   :  { %1708 = vmatmul.mubr.bf16.gmra.mrb[4].mxu0 %v171_v57 }
  0xdd   :  { %1717 = vmatprep.mubr.bf16.mxu0 %v179_v58  ;;  %2840 = vmatpush1.bf16.msra.mxu0 %v4623_v59 }
  0xde   :  { %2841 = vmatprep.subr.bf16.mxu0 %v4628_v62  ;;  %v4650_v62 = vld [vmem:[%s5831_s3 + $0xb0] ss:$8 sps:$4 sm:$0xff]  }
  0xe1   :  { %2160 = vmatmul.mubr.bf16.gmra.mrb[36].mxu1 %v171_v57  ;;  %2842 = vmatpush1.bf16.msra.mxu0 %v4626_v3  ;;  %v136_v57 = vld [vmem:[%s5828_s0 + $0x2c0] sm:$0xff]  ;;  %v214_v3 = vpack.c.bf16 %v158_v61, %v151_v60 }
  0xe2   :  { %2169 = vmatprep.mubr.bf16.mxu1 %v179_v58  ;;  %2843 = vmatprep.subr.bf16.mxu0 %v4631_v4  ;;  %v143_v58 = vld [vmem:[%s5828_s0 + $0x2f8] sm:$0xff]  ;;  %v4653_v4 = vld [vmem:[%s5831_s3 + $0xc0] ss:$8 sps:$4 sm:$0xff]  }
  0xe3   :  { %v206_v2 = vpack.c.bf16 %v143_v58, %v136_v57 }
  0xe4   :  { %1718 = vmatmul.mubr.bf16.gmra.mrb[8].mxu0 %v178_v5 }
  0xe5   :  { %1727 = vmatprep.mubr.bf16.mxu0 %v186_v7  ;;  %2844 = vmatpush1.bf16.msra.mxu0 %v4629_v6 }
  0xe6   :  { %2845 = vmatprep.subr.bf16.mxu0 %v4634_v9  ;;  %v150_v9 = vld [vmem:[%s5828_s0 + $0x330] sm:$0xff] }
  0xe7   :  { %v213_v12 = vpack.c.bf16 %v157_v10, %v150_v9 }
  0xe9   :  { %2170 = vmatmul.mubr.bf16.gmra.mrb[40].mxu1 %v178_v5  ;;  %2846 = vmatpush1.bf16.msra.mxu0 %v4632_v14 }
  0xea   :  { %2179 = vmatprep.mubr.bf16.mxu1 %v186_v7  ;;  %2847 = vmatprep.subr.bf16.mxu0 %v4637_v15 }
  0xec   :  { %v5230_v21 = vpop.f32.mrb[0].mxu1  ;;  %1728 = vmatmul.mubr.bf16.gmra.mrb[12].mxu0 %v185_v17 }
  0xed   :  { %v5235_v23 = vpop.f32.mrb[1].mxu1  ;;  %1737 = vmatprep.mubr.bf16.mxu0 %v193_v18  ;;  %2848 = vmatpush1.bf16.msra.mxu0 %v4635_v20 }
  0xee   :  { %v5237_v24 = vpop.f32.mrb[2].mxu1  ;;  %2849 = vmatprep.subr.bf16.mxu0 %v4640_v22 }
  0xef   :  { %v5245_v27 = vpop.f32.mrb[3].mxu1 }
  0xf1   :  { %2180 = vmatmul.mubr.bf16.gmra.mrb[44].mxu1 %v185_v17  ;;  %2850 = vmatpush1.bf16.msra.mxu0 %v4638_v32 }
  0xf2   :  { %2189 = vmatprep.mubr.bf16.mxu1 %v193_v18  ;;  %2851 = vmatprep.subr.bf16.mxu0 %v4643_v33 }
  0xf4   :  { %v5262_v37 = vpop.f32.mrb[4].mxu1  ;;  %1738 = vmatmul.mubr.bf16.gmra.mrb[16].mxu0 %v192_v34 }
  0xf5   :  { %v5267_v39 = vpop.f32.mrb[5].mxu1  ;;  %1747 = vmatprep.mubr.bf16.mxu0 %v200_v35  ;;  %2852 = vmatpush1.bf16.msra.mxu0 %v4641_v36  ;;  %v4658_v36 = vld [vmem:[%s5831_s3 + $0xd4] ss:$8 sps:$4 sm:$0xff]  }
  0xf6   :  { %v5269_v40 = vpop.f32.mrb[6].mxu1  ;;  %2853 = vmatprep.subr.bf16.mxu0 %v4646_v38  ;;  %v4656_v38 = vld [vmem:[%s5831_s3 + $0xd0] ss:$8 sps:$4 sm:$0xff]  }
  0xf7   :  { %v5277_v44 = vpop.f32.mrb[7].mxu1 }
  0xf9   :  { %2190 = vmatmul.mubr.bf16.gmra.mrb[48].mxu1 %v192_v34  ;;  %2854 = vmatpush1.bf16.msra.mxu0 %v4644_v47  ;;  %v5423_v47 = vld [vmem:[%s5830_s2] sm:$0xf] }
  0xfa   :  { %2199 = vmatprep.mubr.bf16.mxu1 %v200_v35  ;;  %2855 = vmatprep.subr.bf16.mxu0 %v4649_v48 }
  0xfc   :  { %v5294_v52 = vpop.f32.mrb[8].mxu1  ;;  %1748 = vmatmul.mubr.bf16.gmra.mrb[20].mxu0 %v199_v49 }
  0xfd   :  { %v5299_v55 = vpop.f32.mrb[9].mxu1  ;;  %1757 = vmatprep.mubr.bf16.mxu0 %v207_v50  ;;  %2856 = vmatpush1.bf16.msra.mxu0 %v4647_v51 }
  0xfe   :  { %v5301_v56 = vpop.f32.mrb[10].mxu1  ;;  %2857 = vmatprep.subr.bf16.mxu0 %v4652_v54 }
  0xff   :  { %v5309_v59 = vpop.f32.mrb[11].mxu1 }
 0x101   :  { %2200 = vmatmul.mubr.bf16.gmra.mrb[52].mxu1 %v199_v49  ;;  %2858 = vmatpush1.bf16.msra.mxu0 %v4650_v62 }
 0x102   :  { %2209 = vmatprep.mubr.bf16.mxu1 %v207_v50  ;;  %2859 = vmatprep.subr.bf16.mxu0 %v4655_v63 }
 0x104   :  { %v5326_v5 = vpop.f32.mrb[12].mxu1  ;;  %1758 = vmatmul.mubr.bf16.gmra.mrb[24].mxu0 %v206_v2 }
 0x105   :  { %v5328_v6 = vpop.f32.mrb[13].mxu1  ;;  %1767 = vmatprep.mubr.bf16.mxu0 %v214_v3  ;;  %2860 = vmatpush1.bf16.msra.mxu0 %v4653_v4  ;;  %v5447_v4 = vld [vmem:[%s5833_s5 + $0x40] sm:$0xff]  }
 0x106   :  { %v5330_v7 = vpop.f32.mrb[14].mxu1  ;;  %2861 = vmatprep.subr.bf16.mxu0 %v4658_v36  ;;  %3980 = vmatprep.subr.bf16.mxu1 %v5447_v4 }
 0x107   :  { %v5338_v11 = vpop.f32.mrb[15].mxu1 }
 0x109   :  { %2210 = vmatmul.mubr.bf16.gmra.mrb[56].mxu1 %v206_v2  ;;  %2862 = vmatpush1.bf16.msra.mxu0 %v4656_v38 }
 0x10a   :  { %2219 = vmatprep.mubr.bf16.mxu1 %v214_v3 }
 0x10c   :  { %v5340_v13 = vpop.f32.mrb[16].mxu1  ;;  %1768 = vmatmul.mubr.bf16.gmra.mrb[28].mxu0 %v213_v12 }
 0x10d   :  { %v5342_v14 = vpop.f32.mrb[17].mxu1 }
 0x10e   :  { %v5344_v15 = vpop.f32.mrb[18].mxu1 }
 0x10f   :  { %v5346_v17 = vpop.f32.mrb[19].mxu1 }
 0x111   :  { %2220 = vmatmul.mubr.bf16.gmra.mrb[60].mxu1 %v213_v12 }
 0x112   :  { %2262 = vmatprep.mubr.bf16.mxu1 %v4788_v0 }
 0x114   :  { %v5349_v18 = vpop.f32.mrb[20].mxu1 }
 0x115   :  { %v5351_v20 = vpop.f32.mrb[21].mxu1 }
 0x116   :  { %v5353_v22 = vpop.f32.mrb[22].mxu1 }
 0x117   :  { %v5355_v25 = vpop.f32.mrb[23].mxu1 }
 0x119   :  { %3770 = vmatmul.mubr.msk.bf16.vlgmr.msra.gmra.mrb[32].mxu1 %vm1414_vm0, %v4861_v8 }
 0x11a   :  { %2272 = vmatprep.mubr.bf16.mxu1 %v4788_v0 }
 0x11c   :  { %v5360_v26 = vpop.f32.mrb[24].mxu1 }
 0x11d   :  { %v5362_v28 = vpop.f32.mrb[25].mxu1 }
 0x11e   :  { %v5364_v30 = vpop.f32.mrb[26].mxu1 }
 0x11f   :  { %v5366_v32 = vpop.f32.mrb[27].mxu1 }
 0x121   :  { %3771 = vmatmul.mubr.msk.bf16.gmra.mrb[36].mxu1 %vm1414_vm0, %v4872_v19  ;;  %v4661_v19 = vld [vmem:[%s5831_s3 + $0xe4] ss:$8 sps:$4 sm:$0xff]  }
 0x122   :  { %2282 = vmatprep.mubr.bf16.mxu1 %v4788_v0  ;;  %2863 = vmatprep.subr.bf16.mxu0 %v4661_v19 }
 0x123   :  { %2864 = vmatpush1.bf16.msra.mxu0 %v4659_v41 }
 0x124   :  { %v5371_v33 = vpop.f32.mrb[28].mxu1  ;;  %2865 = vmatprep.subr.bf16.mxu0 %v4664_v43  ;;  %v4665_v43 = vld [vmem:[%s5831_s3 + $0x100] ss:$8 sps:$4 sm:$0xff]  }
 0x125   :  { %v5373_v34 = vpop.f32.mrb[29].mxu1 }
 0x126   :  { %v5375_v8 = vpop.f32.mrb[30].mxu1 }
 0x127   :  { %v5377_v35 = vpop.f32.mrb[31].mxu1 }
 0x129   :  { %3772 = vmatmul.mubr.msk.bf16.gmra.mrb[40].mxu1 %vm1414_vm0, %v4883_v31  ;;  %v4662_v31 = vld [vmem:[%s5831_s3 + $0xf0] ss:$8 sps:$4 sm:$0xff]  }
 0x12a   :  { %2292 = vmatprep.mubr.bf16.mxu1 %v4788_v0  ;;  %2866 = vmatpush1.bf16.msra.mxu0 %v4662_v31 }
 0x12b   :  { %2948 = vmatprep.subr.bf16.mxu0 %v4667_v45 }
 0x131   :  { %3773 = vmatmul.mubr.msk.bf16.gmra.mrb[44].mxu1 %vm1414_vm0, %v4894_v42  ;;  %v414_v42 = vlaneseq }
 0x132   :  { %2302 = vmatprep.mubr.bf16.mxu1 %v4788_v0 }
 0x133   :  { %v5417_v46 = vshrl.u32 %v414_v42, 7 }
 0x139   :  { %3774 = vmatmul.mubr.msk.bf16.gmra.mrb[48].mxu1 %vm1414_vm0, %v4905_v53  ;;  %v416_v53 = vsub.s32 0, %v5417_v46 }
 0x13a   :  { %2312 = vmatprep.mubr.bf16.mxu1 %v4788_v0 }
 0x141   :  { %3775 = vmatmul.mubr.msk.bf16.gmra.mrb[52].mxu1 %vm1414_vm0, %v4916_v1  ;;  %v420_v1 = vsub.s32 1, %v5417_v46 }
 0x142   :  { %2322 = vmatprep.mubr.bf16.mxu1 %v4788_v0 }
 0x149   :  { %3776 = vmatmul.mubr.msk.bf16.gmra.mrb[56].mxu1 %vm1414_vm0, %v4933_v16  ;;  %v5429_v16 = vrot.slane %v5423_v47, %v416_v53 }
 0x14a   :  { %2332 = vmatprep.mubr.bf16.mxu1 %v4788_v0  ;;  %v5434_v0 = vrot.slane %v5423_v47, %v420_v1 }
 0x151   :  { %3777 = vmatmul.mubr.msk.bf16.gmra.mrb[60].mxu1 %vm1414_vm0, %v4944_v29 }
 0x1a7   :  { %v1699_v29 = vpop.f32.mrb[0].mxu0 }
 0x1a8   :  { %v3996_v48 = vadd.f32 %v1699_v29, %v5429_v16  ;;  %v1701_v49 = vpop.f32.mrb[1].mxu0  ;;  %v4670_v29 = vld [vmem:[%s5831_s3 + $0x114] ss:$8 sps:$4 sm:$0xff]  }
 0x1a9   :  { %v3998_v50 = vadd.f32 %v1701_v49, %v5434_v0  ;;  %v1703_v51 = vpop.f32.mrb[2].mxu0 }
 0x1aa   :  { %v3997_v54 = vadd.f32 %v3996_v48, %v5230_v21  ;;  %v4000_v57 = vadd.f32 %v1703_v51, %v5429_v16  ;;  %v1705_v58 = vpop.f32.mrb[3].mxu0  ;;  %v5483_v51 = vld [vmem:[%s5833_s5 + $0x50] sm:$0xff]  }
 0x1ab   :  { %v3999_v60 = vadd.f32 %v3998_v50, %v5235_v23  ;;  %v4002_v61 = vadd.f32 %v1705_v58, %v5434_v0  ;;  %v5452_v23 = vld [vmem:[%s5833_s5] sm:$0xff]   ;;  %v5477_v50 = vld [vmem:[%s5833_s5 + $0x8] sm:$0xff]  }
 0x1ac   :  { %v4001_v62 = vadd.f32 %v4000_v57, %v5237_v24  ;;  %v2343_v2 = vmax.f32 %v3997_v54, 0.0  ;;  %3988 = vmatpush3.bf16.msra.mxu1 %v5452_v23 }
 0x1ad   :  { %v4003_v63 = vadd.f32 %v4002_v61, %v5245_v27  ;;  %v2344_v9 = vmax.f32 %v3999_v60, 0.0  ;;  %v5459_v27 = vld [vmem:[%s5833_s5 + $0x48] sm:$0xff]  }
 0x1ae   :  { %v2347_v3 = vmax.f32 %v4001_v62, 0.0  ;;  %3981 = vmatprep.subr.bf16.mxu1 %v5459_v27 }
 0x1af   :  { %v2348_v21 = vmax.f32 %v4003_v63, 0.0  ;;  %v1709_v10 = vpop.f32.mrb[4].mxu0 }
 0x1b0   :  { %v2407_v12 = vpack.c.bf16 %v2347_v3, %v2343_v2  ;;  %v4004_v24 = vadd.f32 %v1709_v10, %v5429_v16  ;;  %v1711_v36 = vpop.f32.mrb[5].mxu0  ;;  %3989 = vmatpush3.bf16.msra.mxu1 %v5477_v50 }
 0x1b1   :  { %v4006_v38 = vadd.f32 %v1711_v36, %v5434_v0  ;;  %v1713_v19 = vpop.f32.mrb[6].mxu0  ;;  %v2408_v41 = vpack.c.bf16 %v2348_v21, %v2344_v9  ;;  %3982 = vmatprep.subr.bf16.mxu1 %v5483_v51  ;;  %v5503_v9 = vld [vmem:[%s5833_s5 + $0x58] sm:$0xff]  }
 0x1b2   :  { %v4005_v31 = vadd.f32 %v4004_v24, %v5262_v37  ;;  %v4008_v45 = vadd.f32 %v1713_v19, %v5429_v16  ;;  %v1715_v42 = vpop.f32.mrb[7].mxu0  ;;  %v4671_v24 = vld [vmem:[%s5831_s3 + $0x120] ss:$8 sps:$4 sm:$0xff]  }
 0x1b3   :  { %v4007_v48 = vadd.f32 %v4006_v38, %v5267_v39  ;;  %v4010_v49 = vadd.f32 %v1715_v42, %v5434_v0  ;;  %2867 = vmatprep.mubr.bf16.mxu0 %v2408_v41  ;;  %v4668_v39 = vld [vmem:[%s5831_s3 + $0x110] ss:$8 sps:$4 sm:$0xff]   ;;  %v4676_v41 = vld [vmem:[%s5831_s3 + $0x134] ss:$8 sps:$4 sm:$0xff]   ;;  %v5527_v42 = vld [vmem:[%s5833_s5 + $0x60] sm:$0xff]  }
 0x1b4   :  { %v4009_v37 = vadd.f32 %v4008_v45, %v5269_v40  ;;  %2868 = vmatmul.mubr.bf16.vlgmr.msra.gmra.mrb[32].mxu0 %v2407_v12  ;;  %v2351_v57 = vmax.f32 %v4005_v31, 0.0  ;;  %v4673_v40 = vld [vmem:[%s5831_s3 + $0x124] ss:$8 sps:$4 sm:$0xff]   ;;  %v5521_v45 = vld [vmem:[%s5833_s5 + $0x18] sm:$0xff]  }
 0x1b5   :  { %v4011_v54 = vadd.f32 %v4010_v49, %v5277_v44  ;;  %2949 = vmatpush1.bf16.msra.mxu0 %v4665_v43  ;;  %v2352_v60 = vmax.f32 %v4007_v48, 0.0  ;;  %v5497_v44 = vld [vmem:[%s5833_s5 + $0x10] sm:$0xff]  }
 0x1b6   :  { %v2355_v58 = vmax.f32 %v4009_v37, 0.0  ;;  %2950 = vmatprep.subr.bf16.mxu0 %v4670_v29  ;;  %3990 = vmatpush3.bf16.msra.mxu1 %v5497_v44 }
 0x1b7   :  { %v2356_v61 = vmax.f32 %v4011_v54, 0.0  ;;  %v1719_v62 = vpop.f32.mrb[8].mxu0  ;;  %3983 = vmatprep.subr.bf16.mxu1 %v5503_v9 }
 0x1b8   :  { %v4012_v63 = vadd.f32 %v1719_v62, %v5429_v16  ;;  %v1721_v2 = vpop.f32.mrb[9].mxu0  ;;  %v2411_v3 = vpack.c.bf16 %v2355_v58, %v2351_v57 }
 0x1b9   :  { %v4014_v21 = vadd.f32 %v1721_v2, %v5434_v0  ;;  %v1723_v10 = vpop.f32.mrb[10].mxu0  ;;  %v2412_v12 = vpack.c.bf16 %v2356_v61, %v2352_v60  ;;  %2951 = vmatpush1.bf16.msra.mxu0 %v4668_v39  ;;  %v5547_v60 = vld [vmem:[%s5833_s5 + $0x68] sm:$0xff]  }
 0x1ba   :  { %v4013_v36 = vadd.f32 %v4012_v63, %v5294_v52  ;;  %v4016_v38 = vadd.f32 %v1723_v10, %v5429_v16  ;;  %v1725_v19 = vpop.f32.mrb[11].mxu0  ;;  %2952 = vmatprep.subr.bf16.mxu0 %v4673_v40  ;;  %3991 = vmatpush3.bf16.msra.mxu1 %v5521_v45  ;;  %v4677_v2 = vld [vmem:[%s5831_s3 + $0x140] ss:$8 sps:$4 sm:$0xff]  }
 0x1bb   :  { %v4015_v43 = vadd.f32 %v4014_v21, %v5299_v55  ;;  %v4018_v31 = vadd.f32 %v1725_v19, %v5434_v0  ;;  %2877 = vmatprep.mubr.bf16.mxu0 %v2412_v12  ;;  %v4674_v55 = vld [vmem:[%s5831_s3 + $0x130] ss:$8 sps:$4 sm:$0xff]   ;;  %3984 = vmatprep.subr.bf16.mxu1 %v5527_v42  ;;  %v4682_v12 = vld [vmem:[%s5831_s3 + $0x154] ss:$8 sps:$4 sm:$0xff]  }
 0x1bc   :  { %v4017_v52 = vadd.f32 %v4016_v38, %v5301_v56  ;;  %2878 = vmatmul.mubr.bf16.gmra.mrb[36].mxu0 %v2411_v3  ;;  %v2359_v48 = vmax.f32 %v4013_v36, 0.0  ;;  %v4679_v56 = vld [vmem:[%s5831_s3 + $0x144] ss:$8 sps:$4 sm:$0xff]   ;;  %v4680_v19 = vld [vmem:[%s5831_s3 + $0x150] ss:$8 sps:$4 sm:$0xff]  }
 0x1bd   :  { %v4019_v29 = vadd.f32 %v4018_v31, %v5309_v59  ;;  %2953 = vmatpush1.bf16.msra.mxu0 %v4671_v24  ;;  %v2360_v37 = vmax.f32 %v4015_v43, 0.0  ;;  %v5541_v59 = vld [vmem:[%s5833_s5 + $0x20] sm:$0xff]  }
 0x1be   :  { %v2363_v49 = vmax.f32 %v4017_v52, 0.0  ;;  %2954 = vmatprep.subr.bf16.mxu0 %v4676_v41  ;;  %3992 = vmatpush3.bf16.msra.mxu1 %v5541_v59 }
 0x1bf   :  { %v2364_v54 = vmax.f32 %v4019_v29, 0.0  ;;  %v1729_v39 = vpop.f32.mrb[12].mxu0  ;;  %3985 = vmatprep.subr.bf16.mxu1 %v5547_v60 }
 0x1c0   :  { %v4020_v57 = vadd.f32 %v1729_v39, %v5429_v16  ;;  %v1731_v58 = vpop.f32.mrb[13].mxu0  ;;  %v2415_v40 = vpack.c.bf16 %v2363_v49, %v2359_v48 }
 0x1c1   :  { %v4022_v61 = vadd.f32 %v1731_v58, %v5434_v0  ;;  %v1733_v62 = vpop.f32.mrb[14].mxu0  ;;  %v2416_v63 = vpack.c.bf16 %v2364_v54, %v2360_v37  ;;  %2955 = vmatpush1.bf16.msra.mxu0 %v4674_v55  ;;  %v4683_v37 = vld [vmem:[%s5831_s3 + $0x160] ss:$8 sps:$4 sm:$0xff]   ;;  %v4688_v58 = vld [vmem:[%s5831_s3 + $0x174] ss:$8 sps:$4 sm:$0xff]  }
 0x1c2   :  { %v4021_v3 = vadd.f32 %v4020_v57, %v5326_v5  ;;  %v4024_v21 = vadd.f32 %v1733_v62, %v5429_v16  ;;  %v1735_v10 = vpop.f32.mrb[15].mxu0  ;;  %2956 = vmatprep.subr.bf16.mxu0 %v4679_v56 }
 0x1c3   :  { %v4023_v24 = vadd.f32 %v4022_v61, %v5328_v6  ;;  %v4026_v36 = vadd.f32 %v1735_v10, %v5434_v0  ;;  %2887 = vmatprep.mubr.bf16.mxu0 %v2416_v63  ;;  %v4685_v6 = vld [vmem:[%s5831_s3 + $0x164] ss:$8 sps:$4 sm:$0xff]  }
 0x1c4   :  { %v4025_v38 = vadd.f32 %v4024_v21, %v5330_v7  ;;  %2888 = vmatmul.mubr.bf16.gmra.mrb[40].mxu0 %v2415_v40  ;;  %v2367_v41 = vmax.f32 %v4021_v3, 0.0 }
 0x1c5   :  { %v4027_v5 = vadd.f32 %v4026_v36, %v5338_v11  ;;  %2957 = vmatpush1.bf16.msra.mxu0 %v4677_v2  ;;  %v2368_v31 = vmax.f32 %v4023_v24, 0.0 }
 0x1c6   :  { %v2371_v43 = vmax.f32 %v4025_v38, 0.0  ;;  %2958 = vmatprep.subr.bf16.mxu0 %v4682_v12 }
 0x1c7   :  { %v2372_v52 = vmax.f32 %v4027_v5, 0.0  ;;  %v1739_v29 = vpop.f32.mrb[16].mxu0 }
 0x1c8   :  { %v4028_v7 = vadd.f32 %v1739_v29, %v5429_v16  ;;  %v1741_v55 = vpop.f32.mrb[17].mxu0  ;;  %v2419_v48 = vpack.c.bf16 %v2371_v43, %v2367_v41 }
 0x1c9   :  { %v4030_v11 = vadd.f32 %v1741_v55, %v5434_v0  ;;  %v1743_v49 = vpop.f32.mrb[18].mxu0  ;;  %v2420_v56 = vpack.c.bf16 %v2372_v52, %v2368_v31  ;;  %2959 = vmatpush1.bf16.msra.mxu0 %v4680_v19  ;;  %v4689_v19 = vld [vmem:[%s5831_s3 + $0x180] ss:$8 sps:$4 sm:$0xff]   ;;  %v4694_v31 = vld [vmem:[%s5831_s3 + $0x194] ss:$8 sps:$4 sm:$0xff]  }
 0x1ca   :  { %v4029_v54 = vadd.f32 %v4028_v7, %v5340_v13  ;;  %v4032_v39 = vadd.f32 %v1743_v49, %v5429_v16  ;;  %v1745_v57 = vpop.f32.mrb[19].mxu0  ;;  %2960 = vmatprep.subr.bf16.mxu0 %v4685_v6  ;;  %v4686_v13 = vld [vmem:[%s5831_s3 + $0x170] ss:$8 sps:$4 sm:$0xff]  }
 0x1cb   :  { %v4031_v40 = vadd.f32 %v4030_v11, %v5342_v14  ;;  %v4034_v61 = vadd.f32 %v1745_v57, %v5434_v0  ;;  %2897 = vmatprep.mubr.bf16.mxu0 %v2420_v56  ;;  %v4691_v14 = vld [vmem:[%s5831_s3 + $0x184] ss:$8 sps:$4 sm:$0xff]  }
 0x1cc   :  { %v4033_v62 = vadd.f32 %v4032_v39, %v5344_v15  ;;  %2898 = vmatmul.mubr.bf16.gmra.mrb[44].mxu0 %v2419_v48  ;;  %v2375_v2 = vmax.f32 %v4029_v54, 0.0 }
 0x1cd   :  { %v4035_v63 = vadd.f32 %v4034_v61, %v5346_v17  ;;  %2961 = vmatpush1.bf16.msra.mxu0 %v4683_v37  ;;  %v2376_v21 = vmax.f32 %v4031_v40, 0.0  ;;  %v4695_v40 = vld [vmem:[%s5831_s3 + $0x1a0] ss:$8 sps:$4 sm:$0xff]  }
 0x1ce   :  { %v2379_v3 = vmax.f32 %v4033_v62, 0.0  ;;  %2962 = vmatprep.subr.bf16.mxu0 %v4688_v58 }
 0x1cf   :  { %v2380_v10 = vmax.f32 %v4035_v63, 0.0  ;;  %v1749_v12 = vpop.f32.mrb[20].mxu0 }
 0x1d0   :  { %v4036_v15 = vadd.f32 %v1749_v12, %v5429_v16  ;;  %v1751_v24 = vpop.f32.mrb[21].mxu0  ;;  %v2423_v36 = vpack.c.bf16 %v2379_v3, %v2375_v2 }
 0x1d1   :  { %v4038_v17 = vadd.f32 %v1751_v24, %v5434_v0  ;;  %v1753_v38 = vpop.f32.mrb[22].mxu0  ;;  %v2424_v5 = vpack.c.bf16 %v2380_v10, %v2376_v21  ;;  %2963 = vmatpush1.bf16.msra.mxu0 %v4686_v13  ;;  %v4700_v13 = vld [vmem:[%s5831_s3 + $0x1b4] ss:$8 sps:$4 sm:$0xff]  }
 0x1d2   :  { %v4037_v41 = vadd.f32 %v4036_v15, %v5349_v18  ;;  %v4040_v43 = vadd.f32 %v1753_v38, %v5429_v16  ;;  %v1755_v6 = vpop.f32.mrb[23].mxu0  ;;  %2964 = vmatprep.subr.bf16.mxu0 %v4691_v14  ;;  %v4692_v18 = vld [vmem:[%s5831_s3 + $0x190] ss:$8 sps:$4 sm:$0xff]  }
 0x1d3   :  { %v4039_v52 = vadd.f32 %v4038_v17, %v5351_v20  ;;  %v4042_v29 = vadd.f32 %v1755_v6, %v5434_v0  ;;  %2907 = vmatprep.mubr.bf16.mxu0 %v2424_v5  ;;  %v4697_v20 = vld [vmem:[%s5831_s3 + $0x1a4] ss:$8 sps:$4 sm:$0xff]  }
 0x1d4   :  { %v4041_v7 = vadd.f32 %v4040_v43, %v5353_v22  ;;  %2908 = vmatmul.mubr.bf16.gmra.mrb[48].mxu0 %v2423_v36  ;;  %v2383_v48 = vmax.f32 %v4037_v41, 0.0  ;;  %v4701_v41 = vld [vmem:[%s5831_s3 + $0x1c0] ss:$8 sps:$4 sm:$0xff]  }
 0x1d5   :  { %v4043_v55 = vadd.f32 %v4042_v29, %v5355_v25  ;;  %2965 = vmatpush1.bf16.msra.mxu0 %v4689_v19  ;;  %v2384_v49 = vmax.f32 %v4039_v52, 0.0  ;;  %v4706_v52 = vld [vmem:[%s5831_s3 + $0x1d4] ss:$8 sps:$4 sm:$0xff]  }
 0x1d6   :  { %v2387_v11 = vmax.f32 %v4041_v7, 0.0  ;;  %2966 = vmatprep.subr.bf16.mxu0 %v4694_v31 }
 0x1d7   :  { %v2388_v56 = vmax.f32 %v4043_v55, 0.0  ;;  %v1759_v37 = vpop.f32.mrb[24].mxu0 }
 0x1d8   :  { %v4044_v22 = vadd.f32 %v1759_v37, %v5429_v16  ;;  %v1761_v54 = vpop.f32.mrb[25].mxu0  ;;  %v2427_v39 = vpack.c.bf16 %v2387_v11, %v2383_v48  ;;  %v428_v48 = vsub.s32 3, %v5417_v46 }
 0x1d9   :  { %v4046_v25 = vadd.f32 %v1761_v54, %v5434_v0  ;;  %v1763_v57 = vpop.f32.mrb[26].mxu0  ;;  %v2428_v58 = vpack.c.bf16 %v2388_v56, %v2384_v49  ;;  %2967 = vmatpush1.bf16.msra.mxu0 %v4692_v18  ;;  %v424_v18 = vsub.s32 2, %v5417_v46  ;;  %v4712_v54 = vld [vmem:[%s5831_s3 + $0x1f4] ss:$8 sps:$4 sm:$0xff]  }
 0x1da   :  { %v4045_v61 = vadd.f32 %v4044_v22, %v5360_v26  ;;  %v4048_v62 = vadd.f32 %v1763_v57, %v5429_v16  ;;  %v1765_v63 = vpop.f32.mrb[27].mxu0  ;;  %2968 = vmatprep.subr.bf16.mxu0 %v4697_v20  ;;  %v4698_v26 = vld [vmem:[%s5831_s3 + $0x1b0] ss:$8 sps:$4 sm:$0xff]   ;;  %v5656_v37 = vrot.slane %v5423_v47, %v428_v48  ;;  %v4707_v22 = vld [vmem:[%s5831_s3 + $0x1e0] ss:$8 sps:$4 sm:$0xff]  }
 0x1db   :  { %v4047_v2 = vadd.f32 %v4046_v25, %v5362_v28  ;;  %v4050_v3 = vadd.f32 %v1765_v63, %v5434_v0  ;;  %2917 = vmatprep.mubr.bf16.mxu0 %v2428_v58  ;;  %v4703_v28 = vld [vmem:[%s5831_s3 + $0x1c4] ss:$8 sps:$4 sm:$0xff]   ;;  %v5653_v49 = vrot.slane %v5423_v47, %v424_v18  ;;  %v4710_v47 = vld [vmem:[%s5831_s3 + $0x1f0] ss:$8 sps:$4 sm:$0xff]  }
 0x1dc   :  { %v4049_v14 = vadd.f32 %v4048_v62, %v5364_v30  ;;  %2918 = vmatmul.mubr.bf16.gmra.mrb[52].mxu0 %v2427_v39  ;;  %v2391_v10 = vmax.f32 %v4045_v61, 0.0 }
 0x1dd   :  { %v4051_v21 = vadd.f32 %v4050_v3, %v5366_v32  ;;  %2969 = vmatpush1.bf16.msra.mxu0 %v4695_v40  ;;  %v2392_v15 = vmax.f32 %v4047_v2, 0.0 }
 0x1de   :  { %v2395_v12 = vmax.f32 %v4049_v14, 0.0  ;;  %2970 = vmatprep.subr.bf16.mxu0 %v4700_v13 }
 0x1df   :  { %v2396_v24 = vmax.f32 %v4051_v21, 0.0  ;;  %v1769_v36 = vpop.f32.mrb[28].mxu0 }
 0x1e0   :  { %v4052_v30 = vadd.f32 %v1769_v36, %v5429_v16  ;;  %v1771_v17 = vpop.f32.mrb[29].mxu0  ;;  %v2431_v38 = vpack.c.bf16 %v2395_v12, %v2391_v10 }
 0x1e1   :  { %v4054_v32 = vadd.f32 %v1771_v17, %v5434_v0  ;;  %v1773_v5 = vpop.f32.mrb[30].mxu0  ;;  %v2432_v19 = vpack.c.bf16 %v2396_v24, %v2392_v15  ;;  %2971 = vmatpush1.bf16.msra.mxu0 %v4698_v26 }
 0x1e2   :  { %v4053_v43 = vadd.f32 %v4052_v30, %v5371_v33  ;;  %v4056_v6 = vadd.f32 %v1773_v5, %v5429_v16  ;;  %v1775_v31 = vpop.f32.mrb[31].mxu0  ;;  %2972 = vmatprep.subr.bf16.mxu0 %v4703_v28  ;;  %v4704_v16 = vld [vmem:[%s5831_s3 + $0x1d0] ss:$8 sps:$4 sm:$0xff]  }
 0x1e3   :  { %v4055_v29 = vadd.f32 %v4054_v32, %v5373_v34  ;;  %v4058_v7 = vadd.f32 %v1775_v31, %v5434_v0  ;;  %2927 = vmatprep.mubr.bf16.mxu0 %v2432_v19  ;;  %v4709_v34 = vld [vmem:[%s5831_s3 + $0x1e4] ss:$8 sps:$4 sm:$0xff]  }
 0x1e4   :  { %v4057_v55 = vadd.f32 %v4056_v6, %v5375_v8  ;;  %2928 = vmatmul.mubr.bf16.gmra.mrb[56].mxu0 %v2431_v38  ;;  %v2399_v11 = vmax.f32 %v4053_v43, 0.0 }
 0x1e5   :  { %v4059_v33 = vadd.f32 %v4058_v7, %v5377_v35  ;;  %2973 = vmatpush1.bf16.msra.mxu0 %v4701_v41  ;;  %v2400_v8 = vmax.f32 %v4055_v29, 0.0 }
 0x1e6   :  { %v2403_v20 = vmax.f32 %v4057_v55, 0.0  ;;  %2974 = vmatprep.subr.bf16.mxu0 %v4706_v52 }
 0x1e7   :  { %v2404_v0 = vmax.f32 %v4059_v33, 0.0 }
 0x1e8   :  { %v2435_v35 = vpack.c.bf16 %v2403_v20, %v2399_v11 }
 0x1e9   :  { %v2436_v56 = vpack.c.bf16 %v2404_v0, %v2400_v8  ;;  %2975 = vmatpush1.bf16.msra.mxu0 %v4704_v16 }
 0x1ea   :  { %2976 = vmatprep.subr.bf16.mxu0 %v4709_v34 }
 0x1eb   :  { %2937 = vmatprep.mubr.bf16.mxu0 %v2436_v56 }
 0x1ec   :  { %v2264_v39 = vpop.f32.mrb[32].mxu1  ;;  %2938 = vmatmul.mubr.bf16.gmra.mrb[60].mxu0 %v2435_v35 }
 0x1ed   :  { %v4060_v25 = vadd.f32 %v2264_v39, %v5653_v49  ;;  %v2266_v57 = vpop.f32.mrb[33].mxu1  ;;  %2977 = vmatpush1.bf16.msra.mxu0 %v4707_v22 }
 0x1ee   :  { %v4061_v58 = vadd.f32 %v2266_v57, %v5656_v37  ;;  %v2268_v40 = vpop.f32.mrb[34].mxu1  ;;  %2978 = vmatprep.subr.bf16.mxu0 %v4712_v54 }
 0x1ef   :  { %v4062_v61 = vadd.f32 %v2268_v40, %v5653_v49  ;;  %v2270_v62 = vpop.f32.mrb[35].mxu1  ;;  %v2345_v13 = vmax.f32 %v4060_v25, 0.0 }
 0x1f0   :  { %v4063_v63 = vadd.f32 %v2270_v62, %v5656_v37  ;;  %v2346_v3 = vmax.f32 %v4061_v58, 0.0 }
 0x1f1   :  { %v2349_v2 = vmax.f32 %v4062_v61, 0.0  ;;  %2979 = vmatpush1.bf16.msra.mxu0 %v4710_v47 }
 0x1f2   :  { %v2350_v14 = vmax.f32 %v4063_v63, 0.0  ;;  %3868 = vmatprep.subr.bf16.mxu0 %v5447_v4 }
 0x1f3   :  { %v2409_v21 = vpack.c.bf16 %v2349_v2, %v2345_v13 }
 0x1f4   :  { %v2410_v26 = vpack.c.bf16 %v2350_v14, %v2346_v3  ;;  %v2274_v10 = vpop.f32.mrb[36].mxu1 }
 0x1f5   :  { %v4064_v12 = vadd.f32 %v2274_v10, %v5653_v49  ;;  %v2276_v28 = vpop.f32.mrb[37].mxu1 }
 0x1f6   :  { %v4065_v15 = vadd.f32 %v2276_v28, %v5656_v37  ;;  %v2278_v24 = vpop.f32.mrb[38].mxu1  ;;  %2980 = vmatprep.mubr.bf16.mxu0 %v2410_v26 }
 0x1f7   :  { %v4066_v36 = vadd.f32 %v2278_v24, %v5653_v49  ;;  %v2280_v30 = vpop.f32.mrb[39].mxu1  ;;  %2981 = vmatmul.mubr.bf16.vlgmr.msra.gmra.mrb[32].mxu0 %v2409_v21  ;;  %v2353_v38 = vmax.f32 %v4064_v12, 0.0 }
 0x1f8   :  { %v4067_v17 = vadd.f32 %v2280_v30, %v5656_v37  ;;  %3869 = vmatpush3.bf16.msra.mxu0 %v5452_v23  ;;  %v2354_v4 = vmax.f32 %v4065_v15, 0.0 }
 0x1f9   :  { %v2357_v32 = vmax.f32 %v4066_v36, 0.0  ;;  %3870 = vmatprep.subr.bf16.mxu0 %v5459_v27 }
 0x1fa   :  { %v2358_v5 = vmax.f32 %v4067_v17, 0.0 }
 0x1fb   :  { %v2413_v19 = vpack.c.bf16 %v2357_v32, %v2353_v38 }
 0x1fc   :  { %v2414_v41 = vpack.c.bf16 %v2358_v5, %v2354_v4  ;;  %v2284_v43 = vpop.f32.mrb[40].mxu1  ;;  %3871 = vmatpush3.bf16.msra.mxu0 %v5477_v50 }
 0x1fd   :  { %v4068_v6 = vadd.f32 %v2284_v43, %v5653_v49  ;;  %v2286_v31 = vpop.f32.mrb[41].mxu1  ;;  %3872 = vmatprep.subr.bf16.mxu0 %v5483_v51 }
 0x1fe   :  { %v4069_v52 = vadd.f32 %v2286_v31, %v5656_v37  ;;  %v2288_v29 = vpop.f32.mrb[42].mxu1  ;;  %2990 = vmatprep.mubr.bf16.mxu0 %v2414_v41 }
 0x1ff   :  { %v4070_v23 = vadd.f32 %v2288_v29, %v5653_v49  ;;  %v2290_v7 = vpop.f32.mrb[43].mxu1  ;;  %2991 = vmatmul.mubr.bf16.gmra.mrb[36].mxu0 %v2413_v19  ;;  %v2361_v55 = vmax.f32 %v4068_v6, 0.0 }
 0x200   :  { %v4071_v27 = vadd.f32 %v2290_v7, %v5656_v37  ;;  %3873 = vmatpush3.bf16.msra.mxu0 %v5497_v44  ;;  %v2362_v50 = vmax.f32 %v4069_v52, 0.0 }
 0x201   :  { %v2365_v18 = vmax.f32 %v4070_v23, 0.0  ;;  %3874 = vmatprep.subr.bf16.mxu0 %v5503_v9 }
 0x202   :  { %v2366_v33 = vmax.f32 %v4071_v27, 0.0 }
 0x203   :  { %v2417_v16 = vpack.c.bf16 %v2365_v18, %v2361_v55 }
 0x204   :  { %v2418_v51 = vpack.c.bf16 %v2366_v33, %v2362_v50  ;;  %v2294_v48 = vpop.f32.mrb[44].mxu1  ;;  %3875 = vmatpush3.bf16.msra.mxu0 %v5521_v45 }
 0x205   :  { %v4072_v11 = vadd.f32 %v2294_v48, %v5653_v49  ;;  %v2296_v20 = vpop.f32.mrb[45].mxu1  ;;  %3876 = vmatprep.subr.bf16.mxu0 %v5527_v42 }
 0x206   :  { %v4073_v34 = vadd.f32 %v2296_v20, %v5656_v37  ;;  %v2298_v8 = vpop.f32.mrb[46].mxu1  ;;  %3000 = vmatprep.mubr.bf16.mxu0 %v2418_v51 }
 0x207   :  { %v4074_v44 = vadd.f32 %v2298_v8, %v5653_v49  ;;  %v2300_v0 = vpop.f32.mrb[47].mxu1  ;;  %3001 = vmatmul.mubr.bf16.gmra.mrb[40].mxu0 %v2417_v16  ;;  %v2369_v35 = vmax.f32 %v4072_v11, 0.0 }
 0x208   :  { %v4075_v9 = vadd.f32 %v2300_v0, %v5656_v37  ;;  %3877 = vmatpush3.bf16.msra.mxu0 %v5541_v59  ;;  %v2370_v45 = vmax.f32 %v4073_v34, 0.0 }
 0x209   :  { %v2373_v56 = vmax.f32 %v4074_v44, 0.0  ;;  %3878 = vmatprep.subr.bf16.mxu0 %v5547_v60 }
 0x20a   :  { %v2374_v22 = vmax.f32 %v4075_v9, 0.0 }
 0x20b   :  { %v2421_v54 = vpack.c.bf16 %v2373_v56, %v2369_v35 }
 0x20c   :  { %v2422_v42 = vpack.c.bf16 %v2374_v22, %v2370_v45  ;;  %v2304_v39 = vpop.f32.mrb[48].mxu1  ;;  %v4724_v22 = vld [vmem:[%s5833_s5 + $0x28] sm:$0xff]  }
 0x20d   :  { %v4076_v25 = vadd.f32 %v2304_v39, %v5653_v49  ;;  %v2306_v57 = vpop.f32.mrb[49].mxu1  ;;  %3879 = vmatpush3.bf16.msra.mxu0 %v4724_v22  ;;  %3993 = vmatpush3.bf16.msra.mxu1 %v4724_v22  ;;  %v4729_v39 = vld [vmem:[%s5835_s7] sm:$0xff]  }
 0x20e   :  { %v4077_v58 = vadd.f32 %v2306_v57, %v5656_v37  ;;  %v2308_v40 = vpop.f32.mrb[50].mxu1  ;;  %3010 = vmatprep.mubr.bf16.mxu0 %v2422_v42  ;;  %v4728_v42 = vld [vmem:[%s5833_s5 + $0x38] sm:$0xff]  }
 0x20f   :  { %v4078_v47 = vadd.f32 %v2308_v40, %v5653_v49  ;;  %v2310_v61 = vpop.f32.mrb[51].mxu1  ;;  %3011 = vmatmul.mubr.bf16.gmra.mrb[44].mxu0 %v2421_v54  ;;  %v2377_v62 = vmax.f32 %v4076_v25, 0.0  ;;  %v4727_v54 = vld [vmem:[%s5833_s5 + $0x78] sm:$0xff]   ;;  %v2503_v25 = vld [vmem:[%s5832_s4] sm:$0x3] }
 0x210   :  { %v4079_v59 = vadd.f32 %v2310_v61, %v5656_v37  ;;  %v2378_v63 = vmax.f32 %v4077_v58, 0.0  ;;  %v5733_v57 = vrot.slane %v2503_v25, %v416_v53  ;;  %v5737_v58 = vrot.slane %v2503_v25, %v420_v1 }
 0x211   :  { %v2381_v60 = vmax.f32 %v4078_v47, 0.0 }
 0x212   :  { %v2382_v13 = vmax.f32 %v4079_v59, 0.0 }
 0x213   :  { %v2425_v2 = vpack.c.bf16 %v2381_v60, %v2377_v62 }
 0x214   :  { %v2426_v3 = vpack.c.bf16 %v2382_v13, %v2378_v63  ;;  %v2314_v14 = vpop.f32.mrb[52].mxu1 }
 0x215   :  { %v4080_v21 = vadd.f32 %v2314_v14, %v5653_v49  ;;  %v2316_v26 = vpop.f32.mrb[53].mxu1 }
 0x216   :  { %v4081_v10 = vadd.f32 %v2316_v26, %v5656_v37  ;;  %v2318_v12 = vpop.f32.mrb[54].mxu1  ;;  %3020 = vmatprep.mubr.bf16.mxu0 %v2426_v3 }
 0x217   :  { %v4082_v28 = vadd.f32 %v2318_v12, %v5653_v49  ;;  %v2320_v15 = vpop.f32.mrb[55].mxu1  ;;  %3021 = vmatmul.mubr.bf16.gmra.mrb[48].mxu0 %v2425_v2  ;;  %v2385_v36 = vmax.f32 %v4080_v21, 0.0 }
 0x218   :  { %v4083_v24 = vadd.f32 %v2320_v15, %v5656_v37  ;;  %v2386_v17 = vmax.f32 %v4081_v10, 0.0 }
 0x219   :  { %v2389_v30 = vmax.f32 %v4082_v28, 0.0 }
 0x21a   :  { %v2390_v38 = vmax.f32 %v4083_v24, 0.0 }
 0x21b   :  { %v2429_v32 = vpack.c.bf16 %v2389_v30, %v2385_v36 }
 0x21c   :  { %v2430_v4 = vpack.c.bf16 %v2390_v38, %v2386_v17  ;;  %v2324_v5 = vpop.f32.mrb[56].mxu1 }
 0x21d   :  { %v4084_v19 = vadd.f32 %v2324_v5, %v5653_v49  ;;  %v2326_v41 = vpop.f32.mrb[57].mxu1 }
 0x21e   :  { %v4085_v43 = vadd.f32 %v2326_v41, %v5656_v37  ;;  %v2328_v6 = vpop.f32.mrb[58].mxu1  ;;  %3030 = vmatprep.mubr.bf16.mxu0 %v2430_v4 }
 0x21f   :  { %v4086_v31 = vadd.f32 %v2328_v6, %v5653_v49  ;;  %v2330_v52 = vpop.f32.mrb[59].mxu1  ;;  %3031 = vmatmul.mubr.bf16.gmra.mrb[52].mxu0 %v2429_v32  ;;  %v2393_v23 = vmax.f32 %v4084_v19, 0.0 }
 0x220   :  { %v4087_v29 = vadd.f32 %v2330_v52, %v5656_v37  ;;  %v2394_v27 = vmax.f32 %v4085_v43, 0.0 }
 0x221   :  { %v2397_v7 = vmax.f32 %v4086_v31, 0.0 }
 0x222   :  { %v2398_v55 = vmax.f32 %v4087_v29, 0.0 }
 0x223   :  { %v2433_v18 = vpack.c.bf16 %v2397_v7, %v2393_v23 }
 0x224   :  { %v2434_v50 = vpack.c.bf16 %v2398_v55, %v2394_v27  ;;  %v2334_v33 = vpop.f32.mrb[60].mxu1 }
 0x225   :  { %v4088_v16 = vadd.f32 %v2334_v33, %v5653_v49  ;;  %v2336_v51 = vpop.f32.mrb[61].mxu1 }
 0x226   :  { %v4089_v48 = vadd.f32 %v2336_v51, %v5656_v37  ;;  %v2338_v11 = vpop.f32.mrb[62].mxu1  ;;  %3040 = vmatprep.mubr.bf16.mxu0 %v2434_v50 }
 0x227   :  { %v4090_v20 = vadd.f32 %v2338_v11, %v5653_v49  ;;  %v2340_v34 = vpop.f32.mrb[63].mxu1  ;;  %3041 = vmatmul.mubr.bf16.gmra.mrb[56].mxu0 %v2433_v18  ;;  %v2401_v44 = vmax.f32 %v4088_v16, 0.0  ;;  %v4725_v49 = vld [vmem:[%s5833_s5 + $0x70] sm:$0xff]   ;;  %v4730_v11 = vld [vmem:[%s5835_s7 + $0x8] sm:$0xff]  }
 0x228   :  { %v4091_v8 = vadd.f32 %v2340_v34, %v5656_v37  ;;  %v2402_v9 = vmax.f32 %v4089_v48, 0.0  ;;  %v4726_v37 = vld [vmem:[%s5833_s5 + $0x30] sm:$0xff]   ;;  %3880 = vmatprep.subr.bf16.mxu0 %v4725_v49  ;;  %3986 = vmatprep.subr.bf16.mxu1 %v4725_v49 }
 0x229   :  { %v2405_v0 = vmax.f32 %v4090_v20, 0.0  ;;  %3881 = vmatpush3.bf16.msra.mxu0 %v4726_v37  ;;  %3994 = vmatpush3.bf16.msra.mxu1 %v4726_v37 }
 0x22a   :  { %v2406_v35 = vmax.f32 %v4091_v8, 0.0  ;;  %3882 = vmatprep.subr.bf16.mxu0 %v4727_v54  ;;  %3987 = vmatprep.subr.bf16.mxu1 %v4727_v54 }
 0x22b   :  { %v2437_v56 = vpack.c.bf16 %v2405_v0, %v2401_v44 }
 0x22c   :  { %v2438_v45 = vpack.c.bf16 %v2406_v35, %v2402_v9 }
 0x22d   :  { %3883 = vmatpush3.bf16.msra.mxu0 %v4728_v42  ;;  %3995 = vmatpush3.bf16.msra.mxu1 %v4728_v42 }
 0x22e   :  { %3050 = vmatprep.mubr.bf16.mxu0 %v2438_v45  ;;  %3948 = vmatprep.subr.bf16.mxu1 %v4729_v39 }
 0x22f   :  { %3051 = vmatmul.mubr.bf16.gmra.mrb[60].mxu0 %v2437_v56  ;;  %v4731_v56 = vld [vmem:[%s5835_s7 + $0x10] sm:$0xff]  }
 0x2ca   :  { %v2982_v40 = vpop.f32.mrb[32].mxu0 }
 0x2cb   :  { %v4092_v47 = vadd.f32 %v2982_v40, %v5733_v57  ;;  %v2984_v61 = vpop.f32.mrb[33].mxu0 }
 0x2cc   :  { %v4093_v59 = vadd.f32 %v2984_v61, %v5737_v58  ;;  %v2986_v62 = vpop.f32.mrb[34].mxu0 }
 0x2cd   :  { %v4094_v60 = vadd.f32 %v2986_v62, %v5733_v57  ;;  %v2988_v63 = vpop.f32.mrb[35].mxu0  ;;  %v3061_v2 = vmax.f32 %v4092_v47, 0.0 }
 0x2ce   :  { %v4095_v13 = vadd.f32 %v2988_v63, %v5737_v58  ;;  %v3062_v53 = vmax.f32 %v4093_v59, 0.0 }
 0x2cf   :  { %v3063_v3 = vmax.f32 %v4094_v60, 0.0 }
 0x2d0   :  { %v3064_v14 = vmax.f32 %v4095_v13, 0.0 }
 0x2d1   :  { %v3093_v21 = vpack.c.bf16 %v3063_v3, %v3061_v2 }
 0x2d2   :  { %v3094_v46 = vpack.c.bf16 %v3064_v14, %v3062_v53  ;;  %v2992_v1 = vpop.f32.mrb[36].mxu0 }
 0x2d3   :  { %v4096_v26 = vadd.f32 %v2992_v1, %v5733_v57  ;;  %v2994_v10 = vpop.f32.mrb[37].mxu0 }
 0x2d4   :  { %v4097_v12 = vadd.f32 %v2994_v10, %v5737_v58  ;;  %v2996_v28 = vpop.f32.mrb[38].mxu0  ;;  %3276 = vmatprep.mubr.bf16.mxu0 %v3094_v46 }
 0x2d5   :  { %v4098_v15 = vadd.f32 %v2996_v28, %v5733_v57  ;;  %v2998_v24 = vpop.f32.mrb[39].mxu0  ;;  %3277 = vmatmul.mubr.bf16.vlgmr.msra.gmra.mrb[64].mxu0 %v3093_v21  ;;  %v3065_v30 = vmax.f32 %v4096_v26, 0.0 }
 0x2d6   :  { %v4099_v36 = vadd.f32 %v2998_v24, %v5737_v58  ;;  %v3066_v38 = vmax.f32 %v4097_v12, 0.0 }
 0x2d7   :  { %v3067_v17 = vmax.f32 %v4098_v15, 0.0 }
 0x2d8   :  { %v3068_v32 = vmax.f32 %v4099_v36, 0.0 }
 0x2d9   :  { %v3095_v4 = vpack.c.bf16 %v3067_v17, %v3065_v30 }
 0x2da   :  { %v3096_v5 = vpack.c.bf16 %v3068_v32, %v3066_v38  ;;  %v3002_v19 = vpop.f32.mrb[40].mxu0 }
 0x2db   :  { %v4100_v41 = vadd.f32 %v3002_v19, %v5733_v57  ;;  %v3004_v43 = vpop.f32.mrb[41].mxu0 }
 0x2dc   :  { %v4101_v6 = vadd.f32 %v3004_v43, %v5737_v58  ;;  %v3006_v31 = vpop.f32.mrb[42].mxu0  ;;  %3284 = vmatprep.mubr.bf16.mxu0 %v3096_v5 }
 0x2dd   :  { %v4102_v52 = vadd.f32 %v3006_v31, %v5733_v57  ;;  %v3008_v29 = vpop.f32.mrb[43].mxu0  ;;  %3285 = vmatmul.mubr.bf16.gmra.mrb[68].mxu0 %v3095_v4  ;;  %v3069_v7 = vmax.f32 %v4100_v41, 0.0 }
 0x2de   :  { %v4103_v23 = vadd.f32 %v3008_v29, %v5737_v58  ;;  %v3070_v55 = vmax.f32 %v4101_v6, 0.0 }
 0x2df   :  { %v3071_v27 = vmax.f32 %v4102_v52, 0.0 }
 0x2e0   :  { %v3072_v18 = vmax.f32 %v4103_v23, 0.0 }
 0x2e1   :  { %v3097_v50 = vpack.c.bf16 %v3071_v27, %v3069_v7 }
 0x2e2   :  { %v3098_v33 = vpack.c.bf16 %v3072_v18, %v3070_v55  ;;  %v3012_v16 = vpop.f32.mrb[44].mxu0 }
 0x2e3   :  { %v4104_v51 = vadd.f32 %v3012_v16, %v5733_v57  ;;  %v3014_v48 = vpop.f32.mrb[45].mxu0 }
 0x2e4   :  { %v4105_v20 = vadd.f32 %v3014_v48, %v5737_v58  ;;  %v3016_v34 = vpop.f32.mrb[46].mxu0  ;;  %3292 = vmatprep.mubr.bf16.mxu1 %v3098_v33 }
 0x2e5   :  { %v4106_v8 = vadd.f32 %v3016_v34, %v5733_v57  ;;  %v3018_v44 = vpop.f32.mrb[47].mxu0  ;;  %3293 = vmatmul.mubr.bf16.vlgmr.msra.gmra.mrb[64].mxu1 %v3097_v50  ;;  %v3073_v9 = vmax.f32 %v4104_v51, 0.0 }
 0x2e6   :  { %v4107_v0 = vadd.f32 %v3018_v44, %v5737_v58  ;;  %3949 = vmatpush3.bf16.msra.mxu1 %v4729_v39  ;;  %v3074_v45 = vmax.f32 %v4105_v20, 0.0 }
 0x2e7   :  { %v3075_v35 = vmax.f32 %v4106_v8, 0.0  ;;  %3950 = vmatprep.subr.bf16.mxu1 %v4730_v11 }
 0x2e8   :  { %v3076_v22 = vmax.f32 %v4107_v0, 0.0 }
 0x2e9   :  { %v3099_v49 = vpack.c.bf16 %v3075_v35, %v3073_v9  ;;  %v4732_v35 = vld [vmem:[%s5835_s7 + $0x18] sm:$0xff]  }
 0x2ea   :  { %v3100_v37 = vpack.c.bf16 %v3076_v22, %v3074_v45  ;;  %v3022_v54 = vpop.f32.mrb[48].mxu0  ;;  %3951 = vmatpush3.bf16.msra.mxu1 %v4730_v11  ;;  %v4736_v45 = vld [vmem:[%s5835_s7 + $0x38] sm:$0xff]  }
 0x2eb   :  { %v4108_v42 = vadd.f32 %v3022_v54, %v5733_v57  ;;  %v3024_v25 = vpop.f32.mrb[49].mxu0  ;;  %3952 = vmatprep.subr.bf16.mxu1 %v4731_v56 }
 0x2ec   :  { %v4109_v40 = vadd.f32 %v3024_v25, %v5737_v58  ;;  %v3026_v39 = vpop.f32.mrb[50].mxu0  ;;  %3300 = vmatprep.mubr.bf16.mxu1 %v3100_v37 }
 0x2ed   :  { %v4110_v47 = vadd.f32 %v3026_v39, %v5733_v57  ;;  %v3028_v61 = vpop.f32.mrb[51].mxu0  ;;  %3301 = vmatmul.mubr.bf16.gmra.mrb[68].mxu1 %v3099_v49  ;;  %v3077_v62 = vmax.f32 %v4108_v42, 0.0  ;;  %v5795_v49 = vld [vmem:[%s5834_s6] ss:$0 sm:$0xff] }
 0x2ee   :  { %v4111_v59 = vadd.f32 %v3028_v61, %v5737_v58  ;;  %3953 = vmatpush3.bf16.msra.mxu1 %v4731_v56  ;;  %v3078_v63 = vmax.f32 %v4109_v40, 0.0  ;;  %v4735_v56 = vld [vmem:[%s5835_s7 + $0x30] sm:$0xff]  }
 0x2ef   :  { %v3079_v60 = vmax.f32 %v4110_v47, 0.0  ;;  %3954 = vmatprep.subr.bf16.mxu1 %v4732_v35 }
 0x2f0   :  { %v3080_v13 = vmax.f32 %v4111_v59, 0.0 }
 0x2f1   :  { %v3101_v2 = vpack.c.bf16 %v3079_v60, %v3077_v62 }
 0x2f2   :  { %v3102_v3 = vpack.c.bf16 %v3080_v13, %v3078_v63  ;;  %v3032_v53 = vpop.f32.mrb[52].mxu0  ;;  %3955 = vmatpush3.bf16.msra.mxu1 %v4732_v35 }
 0x2f3   :  { %v4112_v14 = vadd.f32 %v3032_v53, %v5733_v57  ;;  %v3034_v21 = vpop.f32.mrb[53].mxu0 }
 0x2f4   :  { %v4113_v46 = vadd.f32 %v3034_v21, %v5737_v58  ;;  %v3036_v1 = vpop.f32.mrb[54].mxu0  ;;  %3308 = vmatprep.mubr.bf16.mxu1 %v3102_v3 }
 0x2f5   :  { %v4114_v26 = vadd.f32 %v3036_v1, %v5733_v57  ;;  %v3038_v10 = vpop.f32.mrb[55].mxu0  ;;  %3309 = vmatmul.mubr.bf16.gmra.mrb[72].mxu1 %v3101_v2  ;;  %v3081_v28 = vmax.f32 %v4112_v14, 0.0 }
 0x2f6   :  { %v4115_v12 = vadd.f32 %v3038_v10, %v5737_v58  ;;  %v3082_v24 = vmax.f32 %v4113_v46, 0.0 }
 0x2f7   :  { %v3083_v15 = vmax.f32 %v4114_v26, 0.0 }
 0x2f8   :  { %v3084_v36 = vmax.f32 %v4115_v12, 0.0 }
 0x2f9   :  { %v3103_v30 = vpack.c.bf16 %v3083_v15, %v3081_v28 }
 0x2fa   :  { %v3104_v17 = vpack.c.bf16 %v3084_v36, %v3082_v24  ;;  %v3042_v38 = vpop.f32.mrb[56].mxu0 }
 0x2fb   :  { %v4116_v32 = vadd.f32 %v3042_v38, %v5733_v57  ;;  %v3044_v4 = vpop.f32.mrb[57].mxu0 }
 0x2fc   :  { %v4117_v5 = vadd.f32 %v3044_v4, %v5737_v58  ;;  %v3046_v19 = vpop.f32.mrb[58].mxu0  ;;  %3316 = vmatprep.mubr.bf16.mxu1 %v3104_v17 }
 0x2fd   :  { %v4118_v41 = vadd.f32 %v3046_v19, %v5733_v57  ;;  %v3048_v43 = vpop.f32.mrb[59].mxu0  ;;  %3317 = vmatmul.mubr.bf16.gmra.mrb[76].mxu1 %v3103_v30  ;;  %v3085_v31 = vmax.f32 %v4116_v32, 0.0 }
 0x2fe   :  { %v4119_v6 = vadd.f32 %v3048_v43, %v5737_v58  ;;  %v3086_v29 = vmax.f32 %v4117_v5, 0.0 }
 0x2ff   :  { %v3087_v52 = vmax.f32 %v4118_v41, 0.0 }
 0x300   :  { %v3088_v23 = vmax.f32 %v4119_v6, 0.0 }
 0x301   :  { %v3105_v7 = vpack.c.bf16 %v3087_v52, %v3085_v31 }
 0x302   :  { %v3106_v27 = vpack.c.bf16 %v3088_v23, %v3086_v29  ;;  %v3052_v55 = vpop.f32.mrb[60].mxu0 }
 0x303   :  { %v4120_v18 = vadd.f32 %v3052_v55, %v5733_v57  ;;  %v3054_v50 = vpop.f32.mrb[61].mxu0 }
 0x304   :  { %v4121_v33 = vadd.f32 %v3054_v50, %v5737_v58  ;;  %v3056_v16 = vpop.f32.mrb[62].mxu0  ;;  %3324 = vmatprep.mubr.bf16.mxu1 %v3106_v27 }
 0x305   :  { %v4122_v51 = vadd.f32 %v3056_v16, %v5733_v57  ;;  %v3058_v48 = vpop.f32.mrb[63].mxu0  ;;  %3325 = vmatmul.mubr.bf16.gmra.mrb[80].mxu1 %v3105_v7  ;;  %v3089_v20 = vmax.f32 %v4120_v18, 0.0  ;;  %v4733_v57 = vld [vmem:[%s5835_s7 + $0x20] sm:$0xff]  }
 0x306   :  { %v4123_v11 = vadd.f32 %v3058_v48, %v5737_v58  ;;  %v3090_v8 = vmax.f32 %v4121_v33, 0.0  ;;  %3956 = vmatprep.subr.bf16.mxu1 %v4733_v57  ;;  %v4734_v58 = vld [vmem:[%s5835_s7 + $0x28] sm:$0xff]  }
 0x307   :  { %v3091_v34 = vmax.f32 %v4122_v51, 0.0  ;;  %3957 = vmatpush3.bf16.msra.mxu1 %v4733_v57 }
 0x308   :  { %v3092_v44 = vmax.f32 %v4123_v11, 0.0  ;;  %3958 = vmatprep.subr.bf16.mxu1 %v4734_v58 }
 0x309   :  { %v3107_v0 = vpack.c.bf16 %v3091_v34, %v3089_v20 }
 0x30a   :  { %v3108_v9 = vpack.c.bf16 %v3092_v44, %v3090_v8 }
 0x30b   :  { %3959 = vmatpush3.bf16.msra.mxu1 %v4734_v58 }
 0x30c   :  { %3332 = vmatprep.mubr.bf16.mxu1 %v3108_v9  ;;  %3960 = vmatprep.subr.bf16.mxu1 %v4735_v56 }
 0x30d   :  { %3333 = vmatmul.mubr.bf16.gmra.mrb[84].mxu1 %v3107_v0 }
 0x30f   :  { %3961 = vmatpush3.bf16.msra.mxu1 %v4735_v56 }
 0x310   :  { %3962 = vmatprep.subr.bf16.mxu1 %v4736_v45 }
 0x313   :  { %3963 = vmatpush3.bf16.msra.mxu1 %v4736_v45 }
 0x3a8   :  { %v3884_v22 = vpop.f32.mrb[64].mxu0 }
 0x3a9   :  { %v3885_v37 = vpop.f32.mrb[65].mxu0 }
 0x3aa   :  { %v3886_v54 = vadd.f32 %v3885_v37, %v3884_v22  ;;  %v3887_v42 = vpop.f32.mrb[66].mxu0 }
 0x3ab   :  { %v3888_v25 = vpop.f32.mrb[67].mxu0 }
 0x3ac   :  { %v3279_v40 = vadd.f32 %v3886_v54, %v5795_v49  ;;  %v3889_v39 = vadd.f32 %v3888_v25, %v3887_v42 }
 0x3ae   :  { %v3282_v47 = vadd.f32 %v3889_v39, %v5795_v49  ;;  %v3341_v61 = vmax.f32 %v3279_v40, 0.0 }
 0x3b0   :  { %v3342_v59 = vmax.f32 %v3282_v47, 0.0  ;;  %v3890_v62 = vpop.f32.mrb[68].mxu0 }
 0x3b1   :  { %v3891_v60 = vpop.f32.mrb[69].mxu0 }
 0x3b2   :  { %v3892_v63 = vadd.f32 %v3891_v60, %v3890_v62  ;;  %v3893_v13 = vpop.f32.mrb[70].mxu0  ;;  %v3357_v2 = vpack.c.bf16 %v3342_v59, %v3341_v61 }
 0x3b3   :  { %v3894_v3 = vpop.f32.mrb[71].mxu0 }
 0x3b4   :  { %v3287_v53 = vadd.f32 %v3892_v63, %v5795_v49  ;;  %v3895_v14 = vadd.f32 %v3894_v3, %v3893_v13  ;;  %3964 = vmatprep.mubr.bf16.mxu1 %v3357_v2 }
 0x3b6   :  { %v3290_v21 = vadd.f32 %v3895_v14, %v5795_v49  ;;  %v3343_v46 = vmax.f32 %v3287_v53, 0.0 }
 0x3b8   :  { %v3344_v1 = vmax.f32 %v3290_v21, 0.0  ;;  %v3896_v26 = vpop.f32.mrb[64].mxu1 }
 0x3b9   :  { %v3897_v10 = vpop.f32.mrb[65].mxu1 }
 0x3ba   :  { %v3358_v12 = vpack.c.bf16 %v3344_v1, %v3343_v46  ;;  %v3898_v28 = vadd.f32 %v3897_v10, %v3896_v26  ;;  %v3899_v15 = vpop.f32.mrb[66].mxu1 }
 0x3bb   :  { %v3900_v24 = vpop.f32.mrb[67].mxu1 }
 0x3bc   :  { %v3295_v36 = vadd.f32 %v3898_v28, %v5795_v49  ;;  %v3901_v30 = vadd.f32 %v3900_v24, %v3899_v15  ;;  %3965 = vmatmul.mubr.bf16.vlgmr.msra.gmra.mrb[88].mxu1 %v3358_v12  ;;  %v3859_v15 = vld [vmem:[%s5836_s8] ss:$0 sm:$0xff] }
 0x3be   :  { %v3298_v17 = vadd.f32 %v3901_v30, %v5795_v49  ;;  %v3345_v38 = vmax.f32 %v3295_v36, 0.0 }
 0x3c0   :  { %v3346_v32 = vmax.f32 %v3298_v17, 0.0  ;;  %v3902_v4 = vpop.f32.mrb[68].mxu1 }
 0x3c1   :  { %v3903_v5 = vpop.f32.mrb[69].mxu1 }
 0x3c2   :  { %v3904_v19 = vadd.f32 %v3903_v5, %v3902_v4  ;;  %v3905_v41 = vpop.f32.mrb[70].mxu1  ;;  %v3359_v43 = vpack.c.bf16 %v3346_v32, %v3345_v38 }
 0x3c3   :  { %v3906_v6 = vpop.f32.mrb[71].mxu1 }
 0x3c4   :  { %v3303_v31 = vadd.f32 %v3904_v19, %v5795_v49  ;;  %v3907_v52 = vadd.f32 %v3906_v6, %v3905_v41  ;;  %3968 = vmatprep.mubr.bf16.mxu1 %v3359_v43 }
 0x3c6   :  { %v3306_v29 = vadd.f32 %v3907_v52, %v5795_v49  ;;  %v3347_v23 = vmax.f32 %v3303_v31, 0.0 }
 0x3c8   :  { %v3348_v7 = vmax.f32 %v3306_v29, 0.0  ;;  %v3908_v27 = vpop.f32.mrb[72].mxu1 }
 0x3c9   :  { %v3909_v55 = vpop.f32.mrb[73].mxu1 }
 0x3ca   :  { %v3910_v18 = vadd.f32 %v3909_v55, %v3908_v27  ;;  %v3911_v50 = vpop.f32.mrb[74].mxu1  ;;  %v3360_v33 = vpack.c.bf16 %v3348_v7, %v3347_v23 }
 0x3cb   :  { %v3912_v16 = vpop.f32.mrb[75].mxu1 }
 0x3cc   :  { %v3311_v51 = vadd.f32 %v3910_v18, %v5795_v49  ;;  %v3913_v48 = vadd.f32 %v3912_v16, %v3911_v50  ;;  %3969 = vmatmul.mubr.bf16.gmra.mrb[92].mxu1 %v3360_v33 }
 0x3ce   :  { %v3314_v11 = vadd.f32 %v3913_v48, %v5795_v49  ;;  %v3349_v20 = vmax.f32 %v3311_v51, 0.0 }
 0x3d0   :  { %v3350_v34 = vmax.f32 %v3314_v11, 0.0  ;;  %v3914_v8 = vpop.f32.mrb[76].mxu1 }
 0x3d1   :  { %v3915_v44 = vpop.f32.mrb[77].mxu1 }
 0x3d2   :  { %v3916_v0 = vadd.f32 %v3915_v44, %v3914_v8  ;;  %v3917_v9 = vpop.f32.mrb[78].mxu1  ;;  %v3361_v35 = vpack.c.bf16 %v3350_v34, %v3349_v20 }
 0x3d3   :  { %v3918_v57 = vpop.f32.mrb[79].mxu1 }
 0x3d4   :  { %v3319_v58 = vadd.f32 %v3916_v0, %v5795_v49  ;;  %v3919_v56 = vadd.f32 %v3918_v57, %v3917_v9  ;;  %3972 = vmatprep.mubr.bf16.mxu1 %v3361_v35 }
 0x3d6   :  { %v3322_v45 = vadd.f32 %v3919_v56, %v5795_v49  ;;  %v3351_v22 = vmax.f32 %v3319_v58, 0.0 }
 0x3d8   :  { %v3352_v37 = vmax.f32 %v3322_v45, 0.0  ;;  %v3920_v54 = vpop.f32.mrb[80].mxu1 }
 0x3d9   :  { %v3921_v42 = vpop.f32.mrb[81].mxu1 }
 0x3da   :  { %v3922_v25 = vadd.f32 %v3921_v42, %v3920_v54  ;;  %v3923_v40 = vpop.f32.mrb[82].mxu1  ;;  %v3362_v39 = vpack.c.bf16 %v3352_v37, %v3351_v22 }
 0x3db   :  { %v3924_v47 = vpop.f32.mrb[83].mxu1 }
 0x3dc   :  { %v3327_v61 = vadd.f32 %v3922_v25, %v5795_v49  ;;  %v3925_v59 = vadd.f32 %v3924_v47, %v3923_v40  ;;  %3973 = vmatmul.mubr.bf16.gmra.mrb[96].mxu1 %v3362_v39 }
 0x3de   :  { %v3330_v62 = vadd.f32 %v3925_v59, %v5795_v49  ;;  %v3353_v60 = vmax.f32 %v3327_v61, 0.0 }
 0x3e0   :  { %v3354_v63 = vmax.f32 %v3330_v62, 0.0  ;;  %v3926_v13 = vpop.f32.mrb[84].mxu1 }
 0x3e1   :  { %v3927_v2 = vpop.f32.mrb[85].mxu1 }
 0x3e2   :  { %v3928_v3 = vadd.f32 %v3927_v2, %v3926_v13  ;;  %v3929_v53 = vpop.f32.mrb[86].mxu1  ;;  %v3363_v14 = vpack.c.bf16 %v3354_v63, %v3353_v60 }
 0x3e3   :  { %v3930_v21 = vpop.f32.mrb[87].mxu1 }
 0x3e4   :  { %v3335_v46 = vadd.f32 %v3928_v3, %v5795_v49  ;;  %v3931_v1 = vadd.f32 %v3930_v21, %v3929_v53  ;;  %3976 = vmatprep.mubr.bf16.mxu1 %v3363_v14 }
 0x3e6   :  { %v3338_v26 = vadd.f32 %v3931_v1, %v5795_v49  ;;  %v3355_v10 = vmax.f32 %v3335_v46, 0.0 }
 0x3e8   :  { %v3356_v12 = vmax.f32 %v3338_v26, 0.0 }
 0x3ea   :  { %v3364_v28 = vpack.c.bf16 %v3356_v12, %v3355_v10 }
 0x3ec   :  { %3977 = vmatmul.mubr.bf16.gmra.mrb[100].mxu1 %v3364_v28 }
 0x48f   :  { %v3966_v24 = vpop.f32.mrb[88].mxu1 }
 0x490   :  { %v3479_v36 = vadd.f32 %v3966_v24, %v3859_v15  ;;  %v3470_v30 = vpop.f32.mrb[89].mxu1 }
 0x491   :  { %v3471_v17 = vadd.f32 %v3859_v15, %v3470_v30  ;;  %v3967_v38 = vpop.f32.mrb[90].mxu1 }
 0x492   :  { %3535 = vst [vmem:[#allocation5 + $0x10] sm:$0xff] %v3479_v36  ;;  %v3482_v32 = vadd.f32 %v3967_v38, %v3859_v15  ;;  %v3473_v4 = vpop.f32.mrb[91].mxu1 }
 0x493   :  { %3533 = vst [vmem:[#allocation5] sm:$0xff] %v3471_v17  ;;  %v3474_v5 = vadd.f32 %v3859_v15, %v3473_v4 }
 0x494   :  { %3536 = vst [vmem:[#allocation5 + $0x18] sm:$0xff] %v3482_v32 }
 0x495   :  { %3534 = vst [vmem:[#allocation5 + $0x8] sm:$0xff] %v3474_v5 }
 0x49f   :  { %v3970_v49 = vpop.f32.mrb[92].mxu1 }
 0x4a0   :  { %v3495_v19 = vadd.f32 %v3970_v49, %v3859_v15  ;;  %v3486_v41 = vpop.f32.mrb[93].mxu1 }
 0x4a1   :  { %v3487_v43 = vadd.f32 %v3859_v15, %v3486_v41  ;;  %v3971_v6 = vpop.f32.mrb[94].mxu1 }
 0x4a2   :  { %3539 = vst [vmem:[#allocation5 + $0x30] sm:$0xff] %v3495_v19  ;;  %v3498_v31 = vadd.f32 %v3971_v6, %v3859_v15  ;;  %v3489_v52 = vpop.f32.mrb[95].mxu1 }
 0x4a3   :  { %3537 = vst [vmem:[#allocation5 + $0x20] sm:$0xff] %v3487_v43  ;;  %v3490_v29 = vadd.f32 %v3859_v15, %v3489_v52 }
 0x4a4   :  { %3540 = vst [vmem:[#allocation5 + $0x38] sm:$0xff] %v3498_v31 }
 0x4a5   :  { %3538 = vst [vmem:[#allocation5 + $0x28] sm:$0xff] %v3490_v29 }
 0x4af   :  { %v3974_v23 = vpop.f32.mrb[96].mxu1 }
 0x4b0   :  { %v3511_v7 = vadd.f32 %v3974_v23, %v3859_v15  ;;  %v3502_v27 = vpop.f32.mrb[97].mxu1 }
 0x4b1   :  { %v3503_v55 = vadd.f32 %v3859_v15, %v3502_v27  ;;  %v3975_v18 = vpop.f32.mrb[98].mxu1 }
 0x4b2   :  { %3543 = vst [vmem:[#allocation5 + $0x50] sm:$0xff] %v3511_v7  ;;  %v3514_v50 = vadd.f32 %v3975_v18, %v3859_v15  ;;  %v3505_v33 = vpop.f32.mrb[99].mxu1 }
 0x4b3   :  { %3541 = vst [vmem:[#allocation5 + $0x40] sm:$0xff] %v3503_v55  ;;  %v3506_v16 = vadd.f32 %v3859_v15, %v3505_v33 }
 0x4b4   :  { %3544 = vst [vmem:[#allocation5 + $0x58] sm:$0xff] %v3514_v50 }
 0x4b5   :  { %3542 = vst [vmem:[#allocation5 + $0x48] sm:$0xff] %v3506_v16 }
 0x4bf   :  { %v3978_v51 = vpop.f32.mrb[100].mxu1 }
 0x4c0   :  { %v3527_v48 = vadd.f32 %v3978_v51, %v3859_v15  ;;  %v3518_v11 = vpop.f32.mrb[101].mxu1 }
 0x4c1   :  { %v3519_v20 = vadd.f32 %v3859_v15, %v3518_v11  ;;  %v3979_v34 = vpop.f32.mrb[102].mxu1 }
 0x4c2   :  { %3547 = vst [vmem:[#allocation5 + $0x70] sm:$0xff] %v3527_v48  ;;  %v3530_v8 = vadd.f32 %v3979_v34, %v3859_v15  ;;  %v3521_v44 = vpop.f32.mrb[103].mxu1 }
 0x4c3   :  { %3545 = vst [vmem:[#allocation5 + $0x60] sm:$0xff] %v3519_v20  ;;  %v3522_v0 = vadd.f32 %v3859_v15, %v3521_v44 }
 0x4c4   :  { %3548 = vst [vmem:[#allocation5 + $0x78] sm:$0xff] %v3530_v8 }
 0x4c5   :  { %3546 = vst [vmem:[#allocation5 + $0x68] sm:$0xff] %v3522_v0 }
 0x4c6   :  { %3553 = vsyncadd [#allocation4], 1920  ;;  %s4789_s8 = smov [#allocation5]  }
 0x4c7   :  { %s3554_s18 = sshll.u32 %s4789_s8, 4  ;;  %s3555_s18 = int_to_ptr.vmem [resolvable:$true] %s3554_s18 }
 0x4c8   :  { %s4759_s19 = scalar_lea.vmem %s3555_s18, 128  ;;  %s4763_s20 = scalar_lea.vmem %s3555_s18, 2048 }
 0x4c9   :  { %p4760_p8 = scmp.ne.s32.totalorder %s3555_s18, %s4759_s19  ;;  %p4764_p9 = scmp.lt.s32.totalorder %s3555_s18, %s3555_s18 }
 0x4ca   :  { %p4765_p10 = scmp.lt.s32.totalorder %s4763_s20, %s4759_s19 }
 0x4cc   :  { %p4766_p11 = por %p4765_p10, %p4764_p9 }
 0x4ce   :  { %p4767_p12 = pnand %p4766_p11, %p4760_p8 }
 0x4d0   :  { %4770 = shalt.err (!%p4767_p12)
}
 0x4d1   :  { %s4771_s23 = scalar_lea.hbm %s5837_s9, 128 }
 0x4d2   :  { %p4772_p13 = scmp.ne.s32.totalorder %s5837_s9, %s4771_s23  ;;  %p4775_p0 = scmp.lt.u32.totalorder %s4771_s23, %s5837_s9 }
 0x4d4   :  { %p4777_p1 = pnand %p4775_p0, %p4772_p13 }
 0x4d6   :  { %4780 = shalt.err (!%p4777_p1)
}
 0x4d7   :  { %s4790_s2 = smov 128   ;;  %s4791_s4 = smov 8  }
 0x4d8   :  { %3560 = dma.vmem_to_hbm [thread:$0]  %s3555_s18, 128, %s5837_s9, [#allocation4], %s4790_s2, %s4790_s2, %s4791_s4  }
 0x4d9   :  { %4783 = dma.done.wait [#allocation4], 2048  }
 0x4da   :  { %4784 = vsyncadd [#allocation4], 4294965248 }
 0x4db   :  { %3564 = vsyncpa [#allocation3], 1 }
 0x4dc   :  { %3565 = vsyncpa [#allocation4], 1 }

</bundles_post_ra>
